<compile_context>
chip_gen: v7x
topology: tpu7x:2x2x1
jax: 0.10.0
libtpu: 0.0.40
codegen_flags: <defaults>
</compile_context>

<pallas_src>
import math

import jax
import jax.numpy as jnp
import numpy as np
from jax.experimental import pallas as pl
from jax.experimental.pallas import tpu as pltpu  # noqa: F401  (TPU backend assumed)

# ----------------------------- configuration --------------------------------
ENCODE_SIZE = 4                      # -> seq_len = encode_size^2 = 16
SEQ = ENCODE_SIZE * ENCODE_SIZE      # 16
BATCH = 2
EMBED = 32
FFN = 64
HEADS = 4
HEAD_DIM = EMBED // HEADS            # 8
SB = SEQ * BATCH                     # 32 folded rows (seq-major, batch-minor)
EPS = 1e-5
NEG = -1e30

# ------------------ parameter-slab layout (one [104,128] f32) ----------------
# rows 0..31  , cols 0..95   : W_qkv^T  (Q cols 0..31 pre-scaled, K 32..63, V 64..95)
# rows 0..31  , cols 96..127 : W_out^T
# rows 32..63 , cols 0..63   : W1^T  (conv1, kernel_size=1)
# rows 32..95 , cols 64..95  : W2^T  (conv2, kernel_size=1)
# row 96  cols 0..95 : b_qkv (Q part pre-scaled)        row 100 cols 0..63 : b1
# row 97  cols 0..31 : b_out                            row 101 cols 0..31 : b2
# row 98  cols 0..31 : gamma1                           row 102 cols 0..31 : gamma2
# row 99  cols 0..31 : beta1                            row 103 cols 0..31 : beta2
COL_WOUT = 3 * EMBED                 # 96
ROW_FFN = EMBED                      # 32
COL_W2 = FFN                         # 64
ROW_VEC = ROW_FFN + FFN              # 96
P_ROWS = ROW_VEC + 8                 # 104 (multiple of 8 sublanes)
P_COLS = 128                         # one full lane tile


def _layer_norm(x, gamma, beta):
    mu = jnp.mean(x, axis=-1, keepdims=True)
    var = jnp.mean(jnp.square(x - mu), axis=-1, keepdims=True)
    return (x - mu) * jax.lax.rsqrt(var + EPS) * gamma + beta


# ------------------------------ Pallas kernel --------------------------------
def encoder_layer_kernel(
    x_ref,        # [SB, E]        rows = flattened (seq, batch)
    p_ref,        # [P_ROWS, 128]  packed parameter slab (see layout above)
    o_ref,        # [SB, E]
):
    x = x_ref[...].astype(jnp.float32)

    # ---- static slices of the packed slab (free; no per-param DMA) ----
    w_qkv = p_ref[0:EMBED, 0:3 * EMBED]                     # [E, 3E]
    w_out = p_ref[0:EMBED, COL_WOUT:COL_WOUT + EMBED]       # [E, E]
    w1t = p_ref[ROW_FFN:ROW_FFN + EMBED, 0:FFN]             # [E, F]
    w2t = p_ref[ROW_FFN:ROW_FFN + FFN, COL_W2:COL_W2 + EMBED]  # [F, E]
    b_qkv = p_ref[ROW_VEC + 0:ROW_VEC + 1, 0:3 * EMBED]     # [1, 3E]
    b_out = p_ref[ROW_VEC + 1:ROW_VEC + 2, 0:EMBED]         # [1, E]
    g1 = p_ref[ROW_VEC + 2:ROW_VEC + 3, 0:EMBED]
    bt1 = p_ref[ROW_VEC + 3:ROW_VEC + 4, 0:EMBED]
    b1 = p_ref[ROW_VEC + 4:ROW_VEC + 5, 0:FFN]              # [1, F]
    b2 = p_ref[ROW_VEC + 5:ROW_VEC + 6, 0:EMBED]
    g2 = p_ref[ROW_VEC + 6:ROW_VEC + 7, 0:EMBED]
    bt2 = p_ref[ROW_VEC + 7:ROW_VEC + 8, 0:EMBED]

    # ---- one wide fused Q/K/V projection (single MXU pass) ----
    qkv = jnp.dot(x, w_qkv, preferred_element_type=jnp.float32) + b_qkv   # [SB, 3E]

    # ---- in-kernel batch mask: rows are seq-major, batch-minor ----
    row = jax.lax.broadcasted_iota(jnp.int32, (SB, SB), 0)
    col = jax.lax.broadcasted_iota(jnp.int32, (SB, SB), 1)
    same_batch = (row % BATCH) == (col % BATCH)

    # ---- per-head attention; contexts lane-packed for one wide out-proj ----
    ctx_heads = []
    for h in range(HEADS):                                  # static unroll, HEADS = 4
        q = qkv[:, h * HEAD_DIM:(h + 1) * HEAD_DIM]                   # scale folded in
        k = qkv[:, EMBED + h * HEAD_DIM:EMBED + (h + 1) * HEAD_DIM]
        v = qkv[:, 2 * EMBED + h * HEAD_DIM:2 * EMBED + (h + 1) * HEAD_DIM]
        s = jax.lax.dot_general(q, k, (((1,), (1,)), ((), ())),
                                preferred_element_type=jnp.float32)    # [SB, SB]
        s = jnp.where(same_batch, s, NEG)                   # kill cross-batch scores
        s = s - jnp.max(s, axis=-1, keepdims=True)
        p_attn = jnp.exp(s)
        p_attn = p_attn * pl.reciprocal(
            jnp.sum(p_attn, axis=-1, keepdims=True), approx=False)
        ctx_heads.append(jnp.dot(p_attn, v, preferred_element_type=jnp.float32))
    ctx = jnp.concatenate(ctx_heads, axis=-1)               # [SB, E] lane-packed heads

    attn = jnp.dot(ctx, w_out, preferred_element_type=jnp.float32) + b_out
    x1 = _layer_norm(attn + x, g1, bt1)                     # [SB, E]

    # ---- CNN feed-forward: conv1x1 -> ReLU -> conv1x1 (== two linears) ----
    h1 = jnp.maximum(
        jnp.dot(x1, w1t, preferred_element_type=jnp.float32) + b1, 0.0)  # [SB, F]
    h2 = jnp.dot(h1, w2t, preferred_element_type=jnp.float32) + b2       # [SB, E]
    # dropout is identity in inference mode.
    x2 = _layer_norm(h2 + x1, g2, bt2)
    o_ref[...] = x2.astype(o_ref.dtype)


# -------------------- one-time host-side weight repacking ---------------------
def prepare_params(p):
    """Pack every parameter into ONE pre-padded [P_ROWS, 128] f32 slab so the
    kernel does a single prologue DMA and only static in-kernel slices."""
    scale = 1.0 / math.sqrt(HEAD_DIM)

    w_in = np.asarray(p["w_in"], np.float32)                # [3E, E]  in_proj_weight
    b_in = np.asarray(p["b_in"], np.float32)                # [3E]
    wq, wk, wv = (w_in[i * EMBED:(i + 1) * EMBED] for i in range(3))
    bq, bk, bv = (b_in[i * EMBED:(i + 1) * EMBED] for i in range(3))

    # [E, 3E], softmax scale folded into the Q columns
    w_qkv_t = np.concatenate([wq.T * scale, wk.T, wv.T], axis=1)
    b_qkv = np.concatenate([bq * scale, bk, bv])            # [3E]

    slab = np.zeros((P_ROWS, P_COLS), np.float32)
    slab[0:EMBED, 0:3 * EMBED] = w_qkv_t
    slab[0:EMBED, COL_WOUT:COL_WOUT + EMBED] = np.asarray(p["w_out"], np.float32).T
    slab[ROW_FFN:ROW_FFN + EMBED, 0:FFN] = np.asarray(p["w1"], np.float32).T
    slab[ROW_FFN:ROW_FFN + FFN, COL_W2:COL_W2 + EMBED] = np.asarray(p["w2"], np.float32).T
    slab[ROW_VEC + 0, 0:3 * EMBED] = b_qkv
    slab[ROW_VEC + 1, 0:EMBED] = np.asarray(p["b_out"], np.float32)
    slab[ROW_VEC + 2, 0:EMBED] = np.asarray(p["g1"], np.float32)
    slab[ROW_VEC + 3, 0:EMBED] = np.asarray(p["bt1"], np.float32)
    slab[ROW_VEC + 4, 0:FFN] = np.asarray(p["b1"], np.float32)
    slab[ROW_VEC + 5, 0:EMBED] = np.asarray(p["b2"], np.float32)
    slab[ROW_VEC + 6, 0:EMBED] = np.asarray(p["g2"], np.float32)
    slab[ROW_VEC + 7, 0:EMBED] = np.asarray(p["bt2"], np.float32)
    return jnp.asarray(slab)


# ------------------------------ host wrapper ---------------------------------
@jax.jit
def encoder_layer(x_sbe, param_slab):
    """x_sbe: [SEQ, BATCH, EMBED] (same layout as the PyTorch module)."""
    x2d = x_sbe.reshape(SB, EMBED)                      # free reshape, no transpose
    out2d = pl.pallas_call(
        encoder_layer_kernel,
        out_shape=jax.ShapeDtypeStruct((SB, EMBED), x_sbe.dtype),
    )(x2d, param_slab)
    return out2d.reshape(SEQ, BATCH, EMBED)             # free reshape back


# ------------------------- pure-JAX reference (check) -------------------------
def reference(x_sbe, p):
    x = jnp.transpose(x_sbe, (1, 0, 2)).astype(jnp.float32)   # [B, S, E]
    qkv = jnp.einsum("bse,fe->bsf", x, p["w_in"]) + p["b_in"]
    q, k, v = jnp.split(qkv, 3, axis=-1)

    def split_heads(t):  # [B, S, E] -> [B, H, S, hd]
        return t.reshape(BATCH, SEQ, HEADS, HEAD_DIM).transpose(0, 2, 1, 3)

    qh, kh, vh = split_heads(q), split_heads(k), split_heads(v)
    s = jnp.einsum("bhqd,bhkd->bhqk", qh, kh) / math.sqrt(HEAD_DIM)
    pattn = jax.nn.softmax(s, axis=-1)
    o = jnp.einsum("bhqk,bhkd->bhqd", pattn, vh)
    o = o.transpose(0, 2, 1, 3).reshape(BATCH, SEQ, EMBED)
    attn = jnp.einsum("bse,fe->bsf", o, p["w_out"]) + p["b_out"]

    x1 = _layer_norm(attn + x, p["g1"], p["bt1"])
    h1 = jax.nn.relu(jnp.einsum("bse,fe->bsf", x1, p["w1"]) + p["b1"])
    h2 = jnp.einsum("bsf,ef->bse", h1, p["w2"]) + p["b2"]
    x2 = _layer_norm(h2 + x1, p["g2"], p["bt2"])
    return jnp.transpose(x2, (1, 0, 2))


# ----------------------------------- main -------------------------------------
if __name__ == "__main__":
    key = jax.random.PRNGKey(0)
    keys = jax.random.split(key, 10)

    params = {
        "w_in":  0.05 * jax.random.normal(keys[0], (3 * EMBED, EMBED), jnp.float32),
        "b_in":  0.01 * jax.random.normal(keys[1], (3 * EMBED,), jnp.float32),
        "w_out": 0.05 * jax.random.normal(keys[2], (EMBED, EMBED), jnp.float32),
        "b_out": 0.01 * jax.random.normal(keys[3], (EMBED,), jnp.float32),
        "g1":    jnp.ones((EMBED,), jnp.float32),
        "bt1":   jnp.zeros((EMBED,), jnp.float32),
        "w1":    0.05 * jax.random.normal(keys[4], (FFN, EMBED), jnp.float32),
        "b1":    0.01 * jax.random.normal(keys[5], (FFN,), jnp.float32),
        "w2":    0.05 * jax.random.normal(keys[6], (EMBED, FFN), jnp.float32),
        "b2":    0.01 * jax.random.normal(keys[7], (EMBED,), jnp.float32),
        "g2":    jnp.ones((EMBED,), jnp.float32),
        "bt2":   jnp.zeros((EMBED,), jnp.float32),
    }

    param_slab = prepare_params(params)                 # one-time repack -> 1 DMA
    x = jax.random.normal(keys[8], (SEQ, BATCH, EMBED), jnp.float32)

    out = jax.block_until_ready(encoder_layer(x, param_slab))
    ref = jax.block_until_ready(reference(x, params))

    assert out.shape == (SEQ, BATCH, EMBED)
    np.testing.assert_allclose(np.asarray(out), np.asarray(ref),
                               rtol=2e-5, atol=2e-5)
    print("KERNEL_OK")
</pallas_src>

<mosaic_0001>
module attributes {stable_mosaic.version = 11 : i64} {
  func.func @encoder_layer_kernel(%arg0: memref<32x32xf32, #tpu.memory_space<vmem>>, %arg1: memref<104x128xf32, #tpu.memory_space<vmem>>, %arg2: memref<32x32xf32, #tpu.memory_space<vmem>>) attributes {dimension_semantics = [], scalar_prefetch = 0 : i64, scratch_operands = 0 : i64, tpu.core_type = #tpu.core_type<tc>} {
    %c0 = arith.constant 0 : index
    %c0_0 = arith.constant 0 : index
    %0 = vector.load %arg0[%c0, %c0_0] : memref<32x32xf32, #tpu.memory_space<vmem>>, vector<32x32xf32>
    %c0_1 = arith.constant 0 : index
    %c0_2 = arith.constant 0 : index
    %1 = vector.load %arg1[%c0_1, %c0_2] : memref<104x128xf32, #tpu.memory_space<vmem>>, vector<32x96xf32>
    %c0_3 = arith.constant 0 : index
    %c96 = arith.constant 96 : index
    %2 = vector.load %arg1[%c0_3, %c96] : memref<104x128xf32, #tpu.memory_space<vmem>>, vector<32x32xf32>
    %c32 = arith.constant 32 : index
    %c0_4 = arith.constant 0 : index
    %3 = vector.load %arg1[%c32, %c0_4] : memref<104x128xf32, #tpu.memory_space<vmem>>, vector<32x64xf32>
    %c32_5 = arith.constant 32 : index
    %c64 = arith.constant 64 : index
    %4 = vector.load %arg1[%c32_5, %c64] : memref<104x128xf32, #tpu.memory_space<vmem>>, vector<64x32xf32>
    %c96_6 = arith.constant 96 : index
    %c0_7 = arith.constant 0 : index
    %5 = vector.load %arg1[%c96_6, %c0_7] : memref<104x128xf32, #tpu.memory_space<vmem>>, vector<1x96xf32>
    %c97 = arith.constant 97 : index
    %c0_8 = arith.constant 0 : index
    %6 = vector.load %arg1[%c97, %c0_8] : memref<104x128xf32, #tpu.memory_space<vmem>>, vector<1x32xf32>
    %c98 = arith.constant 98 : index
    %c0_9 = arith.constant 0 : index
    %7 = vector.load %arg1[%c98, %c0_9] : memref<104x128xf32, #tpu.memory_space<vmem>>, vector<1x32xf32>
    %c99 = arith.constant 99 : index
    %c0_10 = arith.constant 0 : index
    %8 = vector.load %arg1[%c99, %c0_10] : memref<104x128xf32, #tpu.memory_space<vmem>>, vector<1x32xf32>
    %c100 = arith.constant 100 : index
    %c0_11 = arith.constant 0 : index
    %9 = vector.load %arg1[%c100, %c0_11] : memref<104x128xf32, #tpu.memory_space<vmem>>, vector<1x64xf32>
    %c101 = arith.constant 101 : index
    %c0_12 = arith.constant 0 : index
    %10 = vector.load %arg1[%c101, %c0_12] : memref<104x128xf32, #tpu.memory_space<vmem>>, vector<1x32xf32>
    %c102 = arith.constant 102 : index
    %c0_13 = arith.constant 0 : index
    %11 = vector.load %arg1[%c102, %c0_13] : memref<104x128xf32, #tpu.memory_space<vmem>>, vector<1x32xf32>
    %c103 = arith.constant 103 : index
    %c0_14 = arith.constant 0 : index
    %12 = vector.load %arg1[%c103, %c0_14] : memref<104x128xf32, #tpu.memory_space<vmem>>, vector<1x32xf32>
    %cst = arith.constant dense<0.000000e+00> : vector<32x96xf32>
    %13 = tpu.matmul %0, %1, %cst {dimension_numbers = #tpu.dot_dimension_numbers<[1], [0], [0], [1], [0, 0, 1, 1], [], []>} : vector<32x32xf32>, vector<32x96xf32>, vector<32x96xf32> -> vector<32x96xf32>
    %14 = vector.broadcast %5 : vector<1x96xf32> to vector<32x96xf32>
    %15 = arith.addf %13, %14 : vector<32x96xf32>
    %16 = tpu.iota {dimensions = array<i32: 0>} : vector<32x32xi32>
    %17 = tpu.iota {dimensions = array<i32: 1>} : vector<32x32xi32>
    %c2_i32 = arith.constant 2 : i32
    %c0_i32 = arith.constant 0 : i32
    %18 = arith.cmpi eq, %c2_i32, %c0_i32 : i32
    %c1_i32 = arith.constant 1 : i32
    %19 = arith.select %18, %c1_i32, %c2_i32 : i32
    %20 = vector.broadcast %19 : i32 to vector<32x32xi32>
    %21 = arith.remsi %16, %20 : vector<32x32xi32>
    %c0_i32_15 = arith.constant 0 : i32
    %22 = vector.broadcast %c0_i32_15 : i32 to vector<32x32xi32>
    %23 = arith.cmpi ne, %21, %22 : vector<32x32xi32>
    %c0_i32_16 = arith.constant 0 : i32
    %24 = vector.broadcast %c0_i32_16 : i32 to vector<32x32xi32>
    %25 = arith.cmpi slt, %21, %24 : vector<32x32xi32>
    %c0_i32_17 = arith.constant 0 : i32
    %26 = arith.cmpi slt, %19, %c0_i32_17 : i32
    %27 = vector.broadcast %26 : i1 to vector<32x32xi1>
    %28 = vector.broadcast %27 : vector<32x32xi1> to vector<32x32xi1>
    %29 = arith.xori %25, %28 : vector<32x32xi1>
    %30 = arith.andi %29, %23 : vector<32x32xi1>
    %31 = vector.broadcast %19 : i32 to vector<32x32xi32>
    %32 = arith.addi %21, %31 : vector<32x32xi32>
    %33 = arith.select %30, %32, %21 : vector<32x32xi1>, vector<32x32xi32>
    %c2_i32_18 = arith.constant 2 : i32
    %c0_i32_19 = arith.constant 0 : i32
    %34 = arith.cmpi eq, %c2_i32_18, %c0_i32_19 : i32
    %c1_i32_20 = arith.constant 1 : i32
    %35 = arith.select %34, %c1_i32_20, %c2_i32_18 : i32
    %36 = vector.broadcast %35 : i32 to vector<32x32xi32>
    %37 = arith.remsi %17, %36 : vector<32x32xi32>
    %c0_i32_21 = arith.constant 0 : i32
    %38 = vector.broadcast %c0_i32_21 : i32 to vector<32x32xi32>
    %39 = arith.cmpi ne, %37, %38 : vector<32x32xi32>
    %c0_i32_22 = arith.constant 0 : i32
    %40 = vector.broadcast %c0_i32_22 : i32 to vector<32x32xi32>
    %41 = arith.cmpi slt, %37, %40 : vector<32x32xi32>
    %c0_i32_23 = arith.constant 0 : i32
    %42 = arith.cmpi slt, %35, %c0_i32_23 : i32
    %43 = vector.broadcast %42 : i1 to vector<32x32xi1>
    %44 = vector.broadcast %43 : vector<32x32xi1> to vector<32x32xi1>
    %45 = arith.xori %41, %44 : vector<32x32xi1>
    %46 = arith.andi %45, %39 : vector<32x32xi1>
    %47 = vector.broadcast %35 : i32 to vector<32x32xi32>
    %48 = arith.addi %37, %47 : vector<32x32xi32>
    %49 = arith.select %46, %48, %37 : vector<32x32xi1>, vector<32x32xi32>
    %50 = arith.cmpi eq, %33, %49 : vector<32x32xi32>
    %51 = vector.extract_strided_slice %15 {offsets = [0, 0], sizes = [32, 8], strides = [1, 1]} : vector<32x96xf32> to vector<32x8xf32>
    %52 = vector.extract_strided_slice %15 {offsets = [0, 32], sizes = [32, 8], strides = [1, 1]} : vector<32x96xf32> to vector<32x8xf32>
    %53 = vector.extract_strided_slice %15 {offsets = [0, 64], sizes = [32, 8], strides = [1, 1]} : vector<32x96xf32> to vector<32x8xf32>
    %cst_24 = arith.constant dense<0.000000e+00> : vector<32x32xf32>
    %54 = tpu.matmul %51, %52, %cst_24 {dimension_numbers = #tpu.dot_dimension_numbers<[1], [1], [0], [0], [0, 0, 1, 0], [], []>} : vector<32x8xf32>, vector<32x8xf32>, vector<32x32xf32> -> vector<32x32xf32>
    %cst_25 = arith.constant -1.000000e+30 : f32
    %55 = vector.broadcast %cst_25 : f32 to vector<32x32xf32>
    %56 = arith.select %50, %54, %55 : vector<32x32xi1>, vector<32x32xf32>
    %cst_26 = arith.constant dense<0xFF800000> : vector<32xf32>
    %57 = vector.multi_reduction <maximumf>, %56, %cst_26 [1] : vector<32x32xf32> to vector<32xf32>
    %58 = vector.shape_cast %57 : vector<32xf32> to vector<32x1xf32>
    %59 = vector.broadcast %58 : vector<32x1xf32> to vector<32x32xf32>
    %60 = arith.subf %56, %59 : vector<32x32xf32>
    %61 = math.exp %60 : vector<32x32xf32>
    %cst_27 = arith.constant dense<0.000000e+00> : vector<32xf32>
    %62 = vector.multi_reduction <add>, %61, %cst_27 [1] : vector<32x32xf32> to vector<32xf32>
    %63 = vector.shape_cast %62 : vector<32xf32> to vector<32x1xf32>
    %64 = tpu.reciprocal %63 : vector<32x1xf32> -> vector<32x1xf32>
    %65 = vector.broadcast %64 : vector<32x1xf32> to vector<32x32xf32>
    %66 = arith.mulf %61, %65 : vector<32x32xf32>
    %cst_28 = arith.constant dense<0.000000e+00> : vector<32x8xf32>
    %67 = tpu.matmul %66, %53, %cst_28 {dimension_numbers = #tpu.dot_dimension_numbers<[1], [0], [0], [1], [0, 0, 1, 1], [], []>} : vector<32x32xf32>, vector<32x8xf32>, vector<32x8xf32> -> vector<32x8xf32>
    %68 = vector.extract_strided_slice %15 {offsets = [0, 8], sizes = [32, 8], strides = [1, 1]} : vector<32x96xf32> to vector<32x8xf32>
    %69 = vector.extract_strided_slice %15 {offsets = [0, 40], sizes = [32, 8], strides = [1, 1]} : vector<32x96xf32> to vector<32x8xf32>
    %70 = vector.extract_strided_slice %15 {offsets = [0, 72], sizes = [32, 8], strides = [1, 1]} : vector<32x96xf32> to vector<32x8xf32>
    %cst_29 = arith.constant dense<0.000000e+00> : vector<32x32xf32>
    %71 = tpu.matmul %68, %69, %cst_29 {dimension_numbers = #tpu.dot_dimension_numbers<[1], [1], [0], [0], [0, 0, 1, 0], [], []>} : vector<32x8xf32>, vector<32x8xf32>, vector<32x32xf32> -> vector<32x32xf32>
    %cst_30 = arith.constant -1.000000e+30 : f32
    %72 = vector.broadcast %cst_30 : f32 to vector<32x32xf32>
    %73 = arith.select %50, %71, %72 : vector<32x32xi1>, vector<32x32xf32>
    %cst_31 = arith.constant dense<0xFF800000> : vector<32xf32>
    %74 = vector.multi_reduction <maximumf>, %73, %cst_31 [1] : vector<32x32xf32> to vector<32xf32>
    %75 = vector.shape_cast %74 : vector<32xf32> to vector<32x1xf32>
    %76 = vector.broadcast %75 : vector<32x1xf32> to vector<32x32xf32>
    %77 = arith.subf %73, %76 : vector<32x32xf32>
    %78 = math.exp %77 : vector<32x32xf32>
    %cst_32 = arith.constant dense<0.000000e+00> : vector<32xf32>
    %79 = vector.multi_reduction <add>, %78, %cst_32 [1] : vector<32x32xf32> to vector<32xf32>
    %80 = vector.shape_cast %79 : vector<32xf32> to vector<32x1xf32>
    %81 = tpu.reciprocal %80 : vector<32x1xf32> -> vector<32x1xf32>
    %82 = vector.broadcast %81 : vector<32x1xf32> to vector<32x32xf32>
    %83 = arith.mulf %78, %82 : vector<32x32xf32>
    %cst_33 = arith.constant dense<0.000000e+00> : vector<32x8xf32>
    %84 = tpu.matmul %83, %70, %cst_33 {dimension_numbers = #tpu.dot_dimension_numbers<[1], [0], [0], [1], [0, 0, 1, 1], [], []>} : vector<32x32xf32>, vector<32x8xf32>, vector<32x8xf32> -> vector<32x8xf32>
    %85 = vector.extract_strided_slice %15 {offsets = [0, 16], sizes = [32, 8], strides = [1, 1]} : vector<32x96xf32> to vector<32x8xf32>
    %86 = vector.extract_strided_slice %15 {offsets = [0, 48], sizes = [32, 8], strides = [1, 1]} : vector<32x96xf32> to vector<32x8xf32>
    %87 = vector.extract_strided_slice %15 {offsets = [0, 80], sizes = [32, 8], strides = [1, 1]} : vector<32x96xf32> to vector<32x8xf32>
    %cst_34 = arith.constant dense<0.000000e+00> : vector<32x32xf32>
    %88 = tpu.matmul %85, %86, %cst_34 {dimension_numbers = #tpu.dot_dimension_numbers<[1], [1], [0], [0], [0, 0, 1, 0], [], []>} : vector<32x8xf32>, vector<32x8xf32>, vector<32x32xf32> -> vector<32x32xf32>
    %cst_35 = arith.constant -1.000000e+30 : f32
    %89 = vector.broadcast %cst_35 : f32 to vector<32x32xf32>
    %90 = arith.select %50, %88, %89 : vector<32x32xi1>, vector<32x32xf32>
    %cst_36 = arith.constant dense<0xFF800000> : vector<32xf32>
    %91 = vector.multi_reduction <maximumf>, %90, %cst_36 [1] : vector<32x32xf32> to vector<32xf32>
    %92 = vector.shape_cast %91 : vector<32xf32> to vector<32x1xf32>
    %93 = vector.broadcast %92 : vector<32x1xf32> to vector<32x32xf32>
    %94 = arith.subf %90, %93 : vector<32x32xf32>
    %95 = math.exp %94 : vector<32x32xf32>
    %cst_37 = arith.constant dense<0.000000e+00> : vector<32xf32>
    %96 = vector.multi_reduction <add>, %95, %cst_37 [1] : vector<32x32xf32> to vector<32xf32>
    %97 = vector.shape_cast %96 : vector<32xf32> to vector<32x1xf32>
    %98 = tpu.reciprocal %97 : vector<32x1xf32> -> vector<32x1xf32>
    %99 = vector.broadcast %98 : vector<32x1xf32> to vector<32x32xf32>
    %100 = arith.mulf %95, %99 : vector<32x32xf32>
    %cst_38 = arith.constant dense<0.000000e+00> : vector<32x8xf32>
    %101 = tpu.matmul %100, %87, %cst_38 {dimension_numbers = #tpu.dot_dimension_numbers<[1], [0], [0], [1], [0, 0, 1, 1], [], []>} : vector<32x32xf32>, vector<32x8xf32>, vector<32x8xf32> -> vector<32x8xf32>
    %102 = vector.extract_strided_slice %15 {offsets = [0, 24], sizes = [32, 8], strides = [1, 1]} : vector<32x96xf32> to vector<32x8xf32>
    %103 = vector.extract_strided_slice %15 {offsets = [0, 56], sizes = [32, 8], strides = [1, 1]} : vector<32x96xf32> to vector<32x8xf32>
    %104 = vector.extract_strided_slice %15 {offsets = [0, 88], sizes = [32, 8], strides = [1, 1]} : vector<32x96xf32> to vector<32x8xf32>
    %cst_39 = arith.constant dense<0.000000e+00> : vector<32x32xf32>
    %105 = tpu.matmul %102, %103, %cst_39 {dimension_numbers = #tpu.dot_dimension_numbers<[1], [1], [0], [0], [0, 0, 1, 0], [], []>} : vector<32x8xf32>, vector<32x8xf32>, vector<32x32xf32> -> vector<32x32xf32>
    %cst_40 = arith.constant -1.000000e+30 : f32
    %106 = vector.broadcast %cst_40 : f32 to vector<32x32xf32>
    %107 = arith.select %50, %105, %106 : vector<32x32xi1>, vector<32x32xf32>
    %cst_41 = arith.constant dense<0xFF800000> : vector<32xf32>
    %108 = vector.multi_reduction <maximumf>, %107, %cst_41 [1] : vector<32x32xf32> to vector<32xf32>
    %109 = vector.shape_cast %108 : vector<32xf32> to vector<32x1xf32>
    %110 = vector.broadcast %109 : vector<32x1xf32> to vector<32x32xf32>
    %111 = arith.subf %107, %110 : vector<32x32xf32>
    %112 = math.exp %111 : vector<32x32xf32>
    %cst_42 = arith.constant dense<0.000000e+00> : vector<32xf32>
    %113 = vector.multi_reduction <add>, %112, %cst_42 [1] : vector<32x32xf32> to vector<32xf32>
    %114 = vector.shape_cast %113 : vector<32xf32> to vector<32x1xf32>
    %115 = tpu.reciprocal %114 : vector<32x1xf32> -> vector<32x1xf32>
    %116 = vector.broadcast %115 : vector<32x1xf32> to vector<32x32xf32>
    %117 = arith.mulf %112, %116 : vector<32x32xf32>
    %cst_43 = arith.constant dense<0.000000e+00> : vector<32x8xf32>
    %118 = tpu.matmul %117, %104, %cst_43 {dimension_numbers = #tpu.dot_dimension_numbers<[1], [0], [0], [1], [0, 0, 1, 1], [], []>} : vector<32x32xf32>, vector<32x8xf32>, vector<32x8xf32> -> vector<32x8xf32>
    %119 = tpu.concatenate %67, %84, %101, %118 in 1 : vector<32x8xf32>, vector<32x8xf32>, vector<32x8xf32>, vector<32x8xf32> -> vector<32x32xf32>
    %cst_44 = arith.constant dense<0.000000e+00> : vector<32x32xf32>
    %120 = tpu.matmul %119, %2, %cst_44 {dimension_numbers = #tpu.dot_dimension_numbers<[1], [0], [0], [1], [0, 0, 1, 1], [], []>} : vector<32x32xf32>, vector<32x32xf32>, vector<32x32xf32> -> vector<32x32xf32>
    %121 = vector.broadcast %6 : vector<1x32xf32> to vector<32x32xf32>
    %122 = arith.addf %120, %121 : vector<32x32xf32>
    %123 = arith.addf %122, %0 : vector<32x32xf32>
    %cst_45 = arith.constant dense<0.000000e+00> : vector<32xf32>
    %124 = vector.multi_reduction <add>, %123, %cst_45 [1] : vector<32x32xf32> to vector<32xf32>
    %125 = vector.shape_cast %124 : vector<32xf32> to vector<32x1xf32>
    %cst_46 = arith.constant 3.200000e+01 : f32
    %126 = vector.broadcast %cst_46 : f32 to vector<32x1xf32>
    %127 = arith.divf %125, %126 : vector<32x1xf32>
    %128 = vector.broadcast %127 : vector<32x1xf32> to vector<32x32xf32>
    %129 = arith.subf %123, %128 : vector<32x32xf32>
    %130 = arith.mulf %129, %129 : vector<32x32xf32>
    %cst_47 = arith.constant dense<0.000000e+00> : vector<32xf32>
    %131 = vector.multi_reduction <add>, %130, %cst_47 [1] : vector<32x32xf32> to vector<32xf32>
    %132 = vector.shape_cast %131 : vector<32xf32> to vector<32x1xf32>
    %cst_48 = arith.constant 3.200000e+01 : f32
    %133 = vector.broadcast %cst_48 : f32 to vector<32x1xf32>
    %134 = arith.divf %132, %133 : vector<32x1xf32>
    %135 = vector.broadcast %127 : vector<32x1xf32> to vector<32x32xf32>
    %136 = arith.subf %123, %135 : vector<32x32xf32>
    %cst_49 = arith.constant 9.99999974E-6 : f32
    %137 = vector.broadcast %cst_49 : f32 to vector<32x1xf32>
    %138 = arith.addf %134, %137 : vector<32x1xf32>
    %139 = math.rsqrt %138 : vector<32x1xf32>
    %140 = vector.broadcast %139 : vector<32x1xf32> to vector<32x32xf32>
    %141 = arith.mulf %136, %140 : vector<32x32xf32>
    %142 = vector.broadcast %7 : vector<1x32xf32> to vector<32x32xf32>
    %143 = arith.mulf %141, %142 : vector<32x32xf32>
    %144 = vector.broadcast %8 : vector<1x32xf32> to vector<32x32xf32>
    %145 = arith.addf %143, %144 : vector<32x32xf32>
    %cst_50 = arith.constant dense<0.000000e+00> : vector<32x64xf32>
    %146 = tpu.matmul %145, %3, %cst_50 {dimension_numbers = #tpu.dot_dimension_numbers<[1], [0], [0], [1], [0, 0, 1, 1], [], []>} : vector<32x32xf32>, vector<32x64xf32>, vector<32x64xf32> -> vector<32x64xf32>
    %147 = vector.broadcast %9 : vector<1x64xf32> to vector<32x64xf32>
    %148 = arith.addf %146, %147 : vector<32x64xf32>
    %cst_51 = arith.constant 0.000000e+00 : f32
    %149 = vector.broadcast %cst_51 : f32 to vector<32x64xf32>
    %150 = arith.maximumf %148, %149 : vector<32x64xf32>
    %cst_52 = arith.constant dense<0.000000e+00> : vector<32x32xf32>
    %151 = tpu.matmul %150, %4, %cst_52 {dimension_numbers = #tpu.dot_dimension_numbers<[1], [0], [0], [1], [0, 0, 1, 1], [], []>} : vector<32x64xf32>, vector<64x32xf32>, vector<32x32xf32> -> vector<32x32xf32>
    %152 = vector.broadcast %10 : vector<1x32xf32> to vector<32x32xf32>
    %153 = arith.addf %151, %152 : vector<32x32xf32>
    %154 = arith.addf %153, %145 : vector<32x32xf32>
    %cst_53 = arith.constant dense<0.000000e+00> : vector<32xf32>
    %155 = vector.multi_reduction <add>, %154, %cst_53 [1] : vector<32x32xf32> to vector<32xf32>
    %156 = vector.shape_cast %155 : vector<32xf32> to vector<32x1xf32>
    %cst_54 = arith.constant 3.200000e+01 : f32
    %157 = vector.broadcast %cst_54 : f32 to vector<32x1xf32>
    %158 = arith.divf %156, %157 : vector<32x1xf32>
    %159 = vector.broadcast %158 : vector<32x1xf32> to vector<32x32xf32>
    %160 = arith.subf %154, %159 : vector<32x32xf32>
    %161 = arith.mulf %160, %160 : vector<32x32xf32>
    %cst_55 = arith.constant dense<0.000000e+00> : vector<32xf32>
    %162 = vector.multi_reduction <add>, %161, %cst_55 [1] : vector<32x32xf32> to vector<32xf32>
    %163 = vector.shape_cast %162 : vector<32xf32> to vector<32x1xf32>
    %cst_56 = arith.constant 3.200000e+01 : f32
    %164 = vector.broadcast %cst_56 : f32 to vector<32x1xf32>
    %165 = arith.divf %163, %164 : vector<32x1xf32>
    %166 = vector.broadcast %158 : vector<32x1xf32> to vector<32x32xf32>
    %167 = arith.subf %154, %166 : vector<32x32xf32>
    %cst_57 = arith.constant 9.99999974E-6 : f32
    %168 = vector.broadcast %cst_57 : f32 to vector<32x1xf32>
    %169 = arith.addf %165, %168 : vector<32x1xf32>
    %170 = math.rsqrt %169 : vector<32x1xf32>
    %171 = vector.broadcast %170 : vector<32x1xf32> to vector<32x32xf32>
    %172 = arith.mulf %167, %171 : vector<32x32xf32>
    %173 = vector.broadcast %11 : vector<1x32xf32> to vector<32x32xf32>
    %174 = arith.mulf %172, %173 : vector<32x32xf32>
    %175 = vector.broadcast %12 : vector<1x32xf32> to vector<32x32xf32>
    %176 = arith.addf %174, %175 : vector<32x32xf32>
    %c0_58 = arith.constant 0 : index
    %c0_59 = arith.constant 0 : index
    %177 = vector.load %arg2[%c0_58, %c0_59] : memref<32x32xf32, #tpu.memory_space<vmem>>, vector<32x32xf32>
    tpu.vector_store %arg2[%c0_58, %c0_59], %176 {strides = array<i32>} : memref<32x32xf32, #tpu.memory_space<vmem>>, vector<32x32xf32>,
    return
  }
}

</mosaic_0001>

<bundles_post_ra>
// kernel: encoder_layer.1
= control target key start
LH: loop header
LB: loop body
LE: loop exit
PB: predicated region body
PF: predicated region fallthrough
CT: control target
= control target key end

     0   :  { %7 = vsyncpa [#allocation3], 0  ;;  %s3056_s0 = inlined_call_operand.hbm [shape: f32[32,32], index: 0, kind: input, shape index: {}]   ;;  %s3057_s1 = inlined_call_operand.hbm [shape: f32[104,128], index: 1, kind: input, shape index: {}]   ;;  %s3058_s2 = inlined_call_operand.hbm [shape: f32[32,32], index: 2, kind: output, shape index: {}]  }
   0x1   :  { %8 = vsyncpa [#allocation6], 0 }
   0x2   :  { %9 = vsyncpa [#allocation4], 0  ;;  %s2668_s9 = smov [#allocation2]   ;;  %s2596_s13 = scalar_lea.hbm %s3056_s0, 512 }
   0x3   :  { %s15_s10 = sshll.u32 %s2668_s9, 4  ;;  %p2597_p0 = scmp.ne.s32.totalorder %s3056_s0, %s2596_s13  ;;  %s16_s10 = int_to_ptr.vmem [resolvable:$true] %s15_s10 }
   0x4   :  { %p2600_p1 = scmp.lt.u32.totalorder %s2596_s13, %s3056_s0 }
   0x6   :  { %p2602_p2 = pnand %p2600_p1, %p2597_p0 }
   0x8   :  { %2605 = shalt.err (!%p2602_p2)
}
   0x9   :  { %s2606_s18 = scalar_lea.vmem %s16_s10, 512  ;;  %p2611_p4 = scmp.lt.s32.totalorder %s16_s10, %s16_s10 }
   0xa   :  { %p2607_p3 = scmp.ne.s32.totalorder %s16_s10, %s2606_s18  ;;  %p2612_p5 = scmp.lt.s32.totalorder %s2606_s18, %s2606_s18 }
   0xc   :  { %p2613_p6 = por %p2612_p5, %p2611_p4 }
   0xe   :  { %p2614_p7 = pnand %p2613_p6, %p2607_p3 }
  0x10   :  { %2617 = shalt.err (!%p2614_p7)
}
  0x11   :  { %s2669_s19 = smov 128   ;;  %s2670_s20 = smov 8  }
  0x12   :  { %21 = dma.hbm_to_vmem [thread:$0]  %s3056_s0, 512, %s16_s10, [#allocation3], %s2669_s19, %s2669_s19, %s2670_s20  }
  0x13   :  { %s2671_s23 = smov [#allocation5]   ;;  %s2618_s27 = scalar_lea.hbm %s3057_s1, 1664 }
  0x14   :  { %s27_s24 = sshll.u32 %s2671_s23, 4  ;;  %p2619_p8 = scmp.ne.s32.totalorder %s3057_s1, %s2618_s27  ;;  %s28_s24 = int_to_ptr.vmem [resolvable:$true] %s27_s24 }
  0x15   :  { %p2622_p9 = scmp.lt.u32.totalorder %s2618_s27, %s3057_s1 }
  0x17   :  { %p2624_p10 = pnand %p2622_p9, %p2619_p8 }
  0x19   :  { %2627 = shalt.err (!%p2624_p10)
}
  0x1a   :  { %s2628_s4 = scalar_lea.vmem %s28_s24, 1664  ;;  %p2633_p12 = scmp.lt.s32.totalorder %s28_s24, %s28_s24 }
  0x1b   :  { %p2629_p11 = scmp.ne.s32.totalorder %s28_s24, %s2628_s4  ;;  %p2634_p13 = scmp.lt.s32.totalorder %s2628_s4, %s2628_s4 }
  0x1d   :  { %p2635_p0 = por %p2634_p13, %p2633_p12 }
  0x1f   :  { %p2636_p1 = pnand %p2635_p0, %p2629_p11 }
  0x21   :  { %2639 = shalt.err (!%p2636_p1)
}
  0x22   :  { %33 = dma.hbm_to_vmem [thread:$0]  %s3057_s1, 1664, %s28_s24, [#allocation6], %s2669_s19, %s2669_s19, %s2670_s20  }
  0x23   :  { %2662 = dma.done.wait [#allocation3], 512  }
  0x24   :  { %2663 = vsyncadd [#allocation3], 4294966784 }
  0x25   :  { %2664 = dma.done.wait [#allocation6], 1664  }
  0x26   :  { %2665 = vsyncadd [#allocation6], 4294965632  ;;  %vm68_vm0 = vcmask 261120   ;;  %v2732_v0 = vld [vmem:[#allocation5] sm:$0xff]  ;;  %v2734_v1 = vld [vmem:[#allocation5 + $0x8] sm:$0xff]  ;;  %vm249_vm1 = vcmask 64512   ;;  %v166_v31 = vlaneseq }
  0x27   :  { %v2736_v2 = vld [vmem:[#allocation5 + $0x10] sm:$0xff]  ;;  %v2482_v3 = vpack.i.bf16 %v2734_v1, %v2732_v0  ;;  %v2263_v4 = vpack.c.bf16 %v2734_v1, %v2732_v0  ;;  %v2742_v5 = vld [vmem:[#allocation5 + $0x18] sm:$0xff]  ;;  %v40_v6 = vld [vmem:[#allocation2] sm:$0xff]  ;;  %s2672_s1 = smov 96   ;;  %s2673_s6 = smov 64   ;;  %vm1382_vm7 = vcmask 130048  }
  0x28   :  { %v2267_v7 = vpack.c.bf16 %v2742_v5, %v2736_v2  ;;  %2095 = vmatprep.mubr.msk.f32.mxu0 %vm68_vm0, %v40_v6  ;;  %v41_v8 = vld [vmem:[#allocation2 + $0x8] sm:$0xff]  ;;  %v42_v9 = vld [vmem:[#allocation2 + $0x10] sm:$0xff]  ;;  %v43_v10 = vld [vmem:[#allocation2 + $0x18] sm:$0xff]  ;;  %v167_v32 = vshrl.u32 %v166_v31, 7  ;;  %v172_v33 = vand.u32 127, %v166_v31  ;;  %s2674_s7 = smov 88  }
  0x29   :  { %2264 = vmatprep.subr.bf16.mxu0 %v2263_v4  ;;  %v1915_v11 = vld [vmem:[#allocation5 + $0x60] ss:$0 sm:$0xff]  ;;  %vm2772_vm2 = vmpackc.low %vm249_vm1, %vm249_vm1  ;;  %s2675_s8 = smov 120   ;;  %s2676_s9 = smov 56   ;;  %vm1387_vm8 = vcmask 195584   ;;  %vm1723_vm9 = vcmask 523264  }
  0x2a   :  { %2266 = vmatpush3.bf16.msra.mxu0 %v2263_v4  ;;  %v168_v34 = vadd.s32 8, %v167_v32  ;;  %v225_v35 = vand.u32 1, %v172_v33  ;;  %v177_v36 = vand.u32 1, %v167_v32  ;;  %v169_v37 = vadd.s32 16, %v167_v32  ;;  %s2677_s10 = smov 80   ;;  %s2678_s11 = smov 112  }
  0x2b   :  { %2268 = vmatprep.subr.bf16.mxu0 %v2267_v7  ;;  %v170_v39 = vadd.s32 24, %v167_v32  ;;  %s2679_s12 = smov 48   ;;  %s2680_s13 = smov 72  }
  0x2c   :  { %v184_v38 = vand.u32 1, %v168_v34  ;;  %vm2790_vm3 = vcmp.eq.s32.totalorder %v177_v36, %v225_v35  ;;  %v191_v41 = vand.u32 1, %v169_v37  ;;  %s2681_s14 = smov 104   ;;  %s2682_s15 = smov 40  }
  0x2d   :  { %v198_v45 = vand.u32 1, %v170_v39  ;;  %s2683_s16 = smov 32   ;;  %s2684_s17 = smov 16  }
  0x2e   :  { %2270 = vmatpush3.bf16.msra.mxu0 %v2267_v7  ;;  %vm2794_vm4 = vcmp.eq.s32.totalorder %v184_v38, %v225_v35  ;;  %vm2801_vm5 = vcmp.eq.s32.totalorder %v191_v41, %v225_v35  ;;  %s2685_s18 = smov 24   ;;  %s2686_s21 = smov [#allocation7]  }
  0x2f   :  { %vm2807_vm6 = vcmp.eq.s32.totalorder %v198_v45, %v225_v35  ;;  %s1902_s22 = sshll.u32 %s2686_s21, 4  ;;  %s1903_s22 = int_to_ptr.vmem [resolvable:$true] %s1902_s22 }
  0x30   :  { %s2640_s23 = scalar_lea.vmem %s1903_s22, 512  ;;  %p2645_p3 = scmp.lt.s32.totalorder %s1903_s22, %s1903_s22 }
  0x31   :  { %2096 = vmatmul.mubr.msk.f32.vlgmr.msra.gmra.mrb[0].mxu0 %vm68_vm0, %v41_v8  ;;  %p2641_p2 = scmp.ne.s32.totalorder %s1903_s22, %s2640_s23  ;;  %p2646_p4 = scmp.lt.s32.totalorder %s2640_s23, %s2640_s23 }
  0x32   :  { %2098 = vmatprep.mubr.msk.f32.mxu0 %vm68_vm0, %v42_v9 }
  0x33   :  { %p2647_p5 = por %p2646_p4, %p2645_p3 }
  0x35   :  { %2099 = vmatmul.mubr.msk.f32.gmra.mrb[2].mxu0 %vm68_vm0, %v43_v10  ;;  %p2648_p6 = pnand %p2647_p5, %p2641_p2 }
 0x104   :  { %v2097_v12 = vpop.f32.mrb[0].mxu0 }
 0x105   :  { %v2750_v13 = vadd.f32 %v2097_v12, %v1915_v11  ;;  %v147_v14 = vpop.f32.mrb[1].mxu0 }
 0x106   :  { %v2752_v15 = vadd.f32 %v1915_v11, %v147_v14 }
 0x108   :  { %2109 = vmatprep.mubr.msk.f32.mxu1 %vm249_vm1, %v2752_v15  ;;  %v2758_v16 = vpack.i.bf16 %v2750_v13, %v2752_v15  ;;  %v2100_v17 = vpop.f32.mrb[2].mxu0 }
 0x109   :  { %v2760_v18 = vadd.f32 %v2100_v17, %v1915_v11  ;;  %v157_v19 = vpop.f32.mrb[3].mxu0 }
 0x10a   :  { %2403 = vrot.lane.b32.xlu0 %v2758_v16, %s2672_s1  ;;  %v2763_v20 = vadd.f32 %v1915_v11, %v157_v19 }
 0x10c   :  { %v2767_v21 = vpack.i.bf16 %v2760_v18, %v2763_v20 }
 0x10e   :  { %2408 = vrot.lane.b32.xlu0 %v2767_v21, %s2672_s1 }
 0x17c   :  { %v2404_v22 = vpop.permute.xlu0 %2403 }
 0x17d   :  { %v2406_v23 = vunpack.i.h.bf16 %v2404_v22  ;;  %v2405_v24 = vunpack.i.l.bf16 %v2404_v22 }
 0x17f   :  { %v2271_v26 = vpack.c.bf16 %v2406_v23, %v2405_v24 }
 0x180   :  { %v2409_v27 = vpop.permute.xlu0 %2408 }
 0x181   :  { %2273 = vmatprep.subr.msk.bf16.mxu1 %vm2772_vm2, %v2271_v26  ;;  %v2411_v28 = vunpack.i.h.bf16 %v2409_v27  ;;  %v2410_v29 = vunpack.i.l.bf16 %v2409_v27 }
 0x182   :  { %2276 = vmatpush3.bf16.xpose.msk.msra.mxu1 %vm2772_vm2, %v2271_v26 }
 0x183   :  { %v2277_v30 = vpack.c.bf16 %v2411_v28, %v2410_v29 }
 0x185   :  { %2279 = vmatprep.subr.msk.bf16.mxu1 %vm2772_vm2, %v2277_v30 }
 0x18a   :  { %2282 = vmatpush3.bf16.xpose.msk.msra.mxu1 %vm2772_vm2, %v2277_v30 }
 0x191   :  { %2110 = vmatmul.mubr.msk.f32.vlgmr.msra.gmra.mrb[0].mxu1 %vm249_vm1, %v2750_v13 }
 0x192   :  { %2112 = vmatprep.mubr.msk.f32.mxu1 %vm249_vm1, %v2763_v20 }
 0x195   :  { %2113 = vmatmul.mubr.msk.f32.gmra.mrb[2].mxu1 %vm249_vm1, %v2760_v18 }
 0x264   :  { %v2111_v42 = vpop.f32.mrb[0].mxu1 }
 0x265   :  { %v332_v44 = vpop.f32.mrb[1].mxu1  ;;  %v352_v49 = vsel %vm2794_vm4, %v2111_v42, -1e+30 }
 0x266   :  { %v351_v46 = vsel %vm2790_vm3, %v332_v44, -1e+30  ;;  %v358_v54 = vsel %vm68_vm0, %v352_v49, -inf }
 0x267   :  { %v355_v47 = vsel %vm68_vm0, %v351_v46, -inf }
 0x268   :  { %356 = vmax.xlane.f32.xlu1 %v355_v47  ;;  %v2114_v50 = vpop.f32.mrb[2].mxu1 }
 0x269   :  { %v342_v52 = vpop.f32.mrb[3].mxu1  ;;  %v354_v56 = vsel %vm2807_vm6, %v2114_v50, -1e+30 }
 0x26a   :  { %v353_v53 = vsel %vm2801_vm5, %v342_v52, -1e+30  ;;  %v364_v57 = vsel %vm68_vm0, %v354_v56, -inf }
 0x26b   :  { %v361_v55 = vsel %vm68_vm0, %v353_v53, -inf }
 0x26c   :  { %359 = vmax.xlane.f32.xlu1 %v358_v54  ;;  %362 = vmax.xlane.f32.xlu0 %v361_v55 }
 0x270   :  { %365 = vmax.xlane.f32.xlu1 %v364_v57 }
 0x281   :  { %2413 = vrot.lane.b32.xlu1 %v2758_v16, %s2673_s6 }
 0x282   :  { %2418 = vrot.lane.b32.xlu0 %v2767_v21, %s2673_s6 }
 0x285   :  { %2423 = vrot.lane.b32.xlu1 %v2758_v16, %s2674_s7 }
 0x286   :  { %512 = vrot.lane.b32.xlu0 %v2763_v20, %s2675_s8 }
 0x289   :  { %2428 = vrot.lane.b32.xlu1 %v2767_v21, %s2674_s7 }
 0x28d   :  { %508 = vrot.lane.b32.xlu1 %v2752_v15, %s2675_s8 }
 0x2f5   :  { %v357_v58 = vpop.xlane.xlu1 %356 }
 0x2f6   :  { %v367_v59 = vsub.f32 %v351_v46, %v357_v58 }
 0x2f8   :  { %v371_v63 = vmul.f32 1.442695, %v367_v59 }
 0x2f9   :  { %v360_v60 = vpop.xlane.xlu1 %359  ;;  %v363_v61 = vpop.xlane.xlu0 %362 }
 0x2fa   :  { %v368_v62 = vsub.f32 %v352_v49, %v360_v60  ;;  %v369_v9 = vsub.f32 %v353_v53, %v363_v61 }
 0x2fc   :  { %v373_v4 = vmul.f32 1.442695, %v368_v62  ;;  %v375_v22 = vmul.f32 1.442695, %v369_v9 }
 0x2fd   :  { %v366_v6 = vpop.xlane.xlu1 %365  ;;  %v2419_v8 = vpop.permute.xlu0 %2418 }
 0x2fe   :  { %2512 = vpow2.f32 %v373_v4  ;;  %v370_v7 = vsub.f32 %v354_v56, %v366_v6  ;;  %v2421_v12 = vunpack.i.h.bf16 %v2419_v8  ;;  %v2420_v14 = vunpack.i.l.bf16 %v2419_v8 }
 0x2ff   :  { %2514 = vpow2.f32 %v371_v63 }
 0x300   :  { %v377_v10 = vmul.f32 1.442695, %v370_v7  ;;  %v2287_v26 = vpack.c.bf16 %v2421_v12, %v2420_v14 }
 0x301   :  { %v2414_v11 = vpop.permute.xlu1 %2413  ;;  %v513_v60 = vpop.permute.xlu0 %512 }
 0x302   :  { %v2416_v17 = vunpack.i.h.bf16 %v2414_v11  ;;  %v2415_v19 = vunpack.i.l.bf16 %v2414_v11  ;;  %2516 = vpow2.f32 %v377_v10 }
 0x303   :  { %2518 = vpow2.f32 %v375_v22 }
 0x304   :  { %v2283_v23 = vpack.c.bf16 %v2416_v17, %v2415_v19 }
 0x305   :  { %v2424_v24 = vpop.permute.xlu1 %2423 }
 0x306   :  { %v2426_v27 = vunpack.i.h.bf16 %v2424_v24  ;;  %v2425_v28 = vunpack.i.l.bf16 %v2424_v24  ;;  %2284 = vmatprep.subr.bf16.mxu0 %v2283_v23 }
 0x307   :  { %2286 = vmatpush3.bf16.msra.mxu0 %v2283_v23 }
 0x308   :  { %v2513_v29 = vpop.eup %2512  ;;  %2288 = vmatprep.subr.bf16.mxu0 %v2287_v26  ;;  %v2291_v32 = vpack.c.bf16 %v2426_v27, %v2425_v28 }
 0x309   :  { %v382_v30 = vsel %vm68_vm0, %v2513_v29, 0.0  ;;  %v2515_v31 = vpop.eup %2514  ;;  %v2429_v38 = vpop.permute.xlu1 %2428 }
 0x30a   :  { %383 = vadd.xlane.f32.xlu1 %v382_v30  ;;  %v379_v33 = vsel %vm68_vm0, %v2515_v31, 0.0  ;;  %v2431_v49 = vunpack.i.h.bf16 %v2429_v38  ;;  %v2430_v50 = vunpack.i.l.bf16 %v2429_v38 }
 0x30b   :  { %2290 = vmatpush3.bf16.msra.mxu0 %v2287_v26 }
 0x30c   :  { %2293 = vmatprep.subr.msk.bf16.mxu0 %vm2772_vm2, %v2291_v32  ;;  %v2517_v34 = vpop.eup %2516  ;;  %v2297_v54 = vpack.c.bf16 %v2431_v49, %v2430_v50 }
 0x30d   :  { %v388_v35 = vsel %vm68_vm0, %v2517_v34, 0.0  ;;  %v2519_v36 = vpop.eup %2518  ;;  %v509_v39 = vpop.permute.xlu1 %508 }
 0x30e   :  { %380 = vadd.xlane.f32.xlu1 %v379_v33  ;;  %v385_v37 = vsel %vm68_vm0, %v2519_v36, 0.0 }
 0x312   :  { %389 = vadd.xlane.f32.xlu1 %v388_v35 }
 0x316   :  { %386 = vadd.xlane.f32.xlu1 %v385_v37 }
 0x327   :  { %510 = vrot.lane.b32.xlu1 %v2750_v13, %s2675_s8 }
 0x32b   :  { %514 = vrot.lane.b32.xlu1 %v2760_v18, %s2675_s8 }
 0x397   :  { %v384_v41 = vpop.xlane.xlu1 %383 }
 0x398   :  { %2520 = vrcp.f32 %v384_v41 }
 0x39b   :  { %v381_v42 = vpop.xlane.xlu1 %380 }
 0x39c   :  { %2522 = vrcp.f32 %v381_v42 }
 0x39f   :  { %v390_v44 = vpop.xlane.xlu1 %389 }
 0x3a0   :  { %2524 = vrcp.f32 %v390_v44 }
 0x3a2   :  { %v2521_v46 = vpop.eup %2520 }
 0x3a3   :  { %v387_v45 = vpop.xlane.xlu1 %386  ;;  %v396_v53 = vmul.f32 %v2521_v46, %v2513_v29 }
 0x3a4   :  { %2526 = vrcp.f32 %v387_v45 }
 0x3a6   :  { %v2523_v47 = vpop.eup %2522 }
 0x3a7   :  { %v395_v52 = vmul.f32 %v2523_v47, %v2515_v31  ;;  %v511_v59 = vpop.permute.xlu1 %510 }
 0x3a9   :  { %2123 = vmatprep.mubr.msk.f32.mxu0 %vm68_vm0, %v395_v52 }
 0x3aa   :  { %2124 = vmatmul.mubr.msk.f32.vlgmr.msra.gmra.mrb[4].mxu0 %vm68_vm0, %v396_v53  ;;  %v2525_v55 = vpop.eup %2524 }
 0x3ab   :  { %2296 = vmatpush3.bf16.xpose.msk.msra.mxu0 %vm2772_vm2, %v2291_v32  ;;  %v398_v58 = vmul.f32 %v2525_v55, %v2517_v34  ;;  %v515_v61 = vpop.permute.xlu1 %514 }
 0x3ac   :  { %2299 = vmatprep.subr.msk.bf16.mxu0 %vm2772_vm2, %v2297_v54 }
 0x3ae   :  { %v2527_v56 = vpop.eup %2526 }
 0x3af   :  { %v397_v57 = vmul.f32 %v2527_v56, %v2519_v36 }
 0x3b1   :  { %2126 = vmatprep.mubr.msk.f32.mxu0 %vm68_vm0, %v397_v57 }
 0x3b2   :  { %2127 = vmatmul.mubr.msk.f32.gmra.mrb[6].mxu0 %vm68_vm0, %v398_v58 }
 0x3b3   :  { %2302 = vmatpush3.bf16.xpose.msk.msra.mxu0 %vm2772_vm2, %v2297_v54  ;;  %2137 = vmatprep.mubr.msk.f32.mxu0 %vm249_vm1, %v509_v39 }
 0x3ba   :  { %2138 = vmatmul.mubr.msk.f32.vlgmr.msra.gmra.mrb[8].mxu0 %vm249_vm1, %v511_v59 }
 0x3bb   :  { %2140 = vmatprep.mubr.msk.f32.mxu0 %vm249_vm1, %v513_v60 }
 0x3be   :  { %2141 = vmatmul.mubr.msk.f32.gmra.mrb[10].mxu0 %vm249_vm1, %v515_v61 }
 0x47d   :  { %v2852_v62 = vpop.f32.mrb[4].mxu0 }
 0x47e   :  { %v2854_v63 = vpop.f32.mrb[5].mxu0 }
 0x485   :  { %v2856_v4 = vpop.f32.mrb[6].mxu0 }
 0x486   :  { %v2858_v6 = vpop.f32.mrb[7].mxu0 }
 0x48d   :  { %v2139_v7 = vpop.f32.mrb[8].mxu0 }
 0x48e   :  { %v626_v8 = vsel %vm2794_vm4, %v2139_v7, -1e+30  ;;  %v606_v9 = vpop.f32.mrb[9].mxu0 }
 0x48f   :  { %v625_v10 = vsel %vm2790_vm3, %v606_v9, -1e+30  ;;  %v632_v11 = vsel %vm68_vm0, %v626_v8, -inf }
 0x490   :  { %633 = vmax.xlane.f32.xlu1 %v632_v11  ;;  %v629_v12 = vsel %vm68_vm0, %v625_v10, -inf }
 0x491   :  { %630 = vmax.xlane.f32.xlu0 %v629_v12  ;;  %v2142_v14 = vpop.f32.mrb[10].mxu0 }
 0x492   :  { %v616_v17 = vpop.f32.mrb[11].mxu0  ;;  %v628_v23 = vsel %vm2807_vm6, %v2142_v14, -1e+30 }
 0x493   :  { %v627_v19 = vsel %vm2801_vm5, %v616_v17, -1e+30  ;;  %v638_v24 = vsel %vm68_vm0, %v628_v23, -inf }
 0x494   :  { %v635_v22 = vsel %vm68_vm0, %v627_v19, -inf }
 0x495   :  { %636 = vmax.xlane.f32.xlu0 %v635_v22 }
 0x499   :  { %639 = vmax.xlane.f32.xlu0 %v638_v24 }
 0x4a1   :  { %2433 = vrot.lane.b32.xlu1 %v2758_v16, %s2676_s9 }
 0x4a5   :  { %2443 = vrot.lane.b32.xlu1 %v2758_v16, %s2677_s10 }
 0x51d   :  { %v634_v26 = vpop.xlane.xlu1 %633 }
 0x51e   :  { %v642_v27 = vsub.f32 %v626_v8, %v634_v26  ;;  %v631_v28 = vpop.xlane.xlu0 %630 }
 0x51f   :  { %v641_v29 = vsub.f32 %v625_v10, %v631_v28 }
 0x520   :  { %v647_v30 = vmul.f32 1.442695, %v642_v27 }
 0x521   :  { %v645_v31 = vmul.f32 1.442695, %v641_v29  ;;  %v2434_v32 = vpop.permute.xlu1 %2433 }
 0x522   :  { %2528 = vpow2.f32 %v647_v30  ;;  %v2436_v33 = vunpack.i.h.bf16 %v2434_v32  ;;  %v2435_v34 = vunpack.i.l.bf16 %v2434_v32  ;;  %v637_v41 = vpop.xlane.xlu0 %636 }
 0x523   :  { %2530 = vpow2.f32 %v645_v31  ;;  %v643_v45 = vsub.f32 %v627_v19, %v637_v41 }
 0x524   :  { %v2303_v35 = vpack.c.bf16 %v2436_v33, %v2435_v34 }
 0x525   :  { %v649_v47 = vmul.f32 1.442695, %v643_v45  ;;  %v2444_v54 = vpop.permute.xlu1 %2443 }
 0x526   :  { %2304 = vmatprep.subr.bf16.mxu1 %v2303_v35  ;;  %v640_v42 = vpop.xlane.xlu0 %639  ;;  %v2446_v58 = vunpack.i.h.bf16 %v2444_v54  ;;  %v2445_v59 = vunpack.i.l.bf16 %v2444_v54 }
 0x527   :  { %2306 = vmatpush3.bf16.msra.mxu1 %v2303_v35  ;;  %v644_v44 = vsub.f32 %v628_v23, %v640_v42 }
 0x528   :  { %v2311_v8 = vpack.c.bf16 %v2446_v58, %v2445_v59 }
 0x529   :  { %v651_v46 = vmul.f32 1.442695, %v644_v44 }
 0x52b   :  { %2532 = vpow2.f32 %v651_v46 }
 0x52c   :  { %v2529_v36 = vpop.eup %2528  ;;  %2534 = vpow2.f32 %v649_v47 }
 0x52d   :  { %v2531_v37 = vpop.eup %2530  ;;  %v656_v38 = vsel %vm68_vm0, %v2529_v36, 0.0 }
 0x52e   :  { %657 = vadd.xlane.f32.xlu0 %v656_v38  ;;  %v653_v39 = vsel %vm68_vm0, %v2531_v37, 0.0 }
 0x52f   :  { %654 = vadd.xlane.f32.xlu1 %v653_v39 }
 0x535   :  { %v2533_v49 = vpop.eup %2532 }
 0x536   :  { %v2535_v50 = vpop.eup %2534  ;;  %v662_v52 = vsel %vm68_vm0, %v2533_v49, 0.0 }
 0x537   :  { %v659_v53 = vsel %vm68_vm0, %v2535_v50, 0.0 }
 0x540   :  { %2448 = vrot.lane.b32.xlu1 %v2767_v21, %s2677_s10 }
 0x544   :  { %2438 = vrot.lane.b32.xlu0 %v2767_v21, %s2676_s9 }
 0x563   :  { %663 = vadd.xlane.f32.xlu0 %v662_v52 }
 0x564   :  { %660 = vadd.xlane.f32.xlu1 %v659_v53 }
 0x575   :  { %784 = vrot.lane.b32.xlu1 %v2750_v13, %s2678_s11 }
 0x579   :  { %788 = vrot.lane.b32.xlu1 %v2760_v18, %s2678_s11  ;;  %782 = vrot.lane.b32.xlu0 %v2752_v15, %s2678_s11 }
 0x57d   :  { %786 = vrot.lane.b32.xlu0 %v2763_v20, %s2678_s11 }
 0x5bb   :  { %v658_v55 = vpop.xlane.xlu0 %657 }
 0x5bc   :  { %2536 = vrcp.f32 %v658_v55  ;;  %v655_v56 = vpop.xlane.xlu1 %654 }
 0x5bd   :  { %2538 = vrcp.f32 %v655_v56 }
 0x5bf   :  { %v2439_v57 = vpop.permute.xlu0 %2438 }
 0x5c0   :  { %v2441_v60 = vunpack.i.h.bf16 %v2439_v57  ;;  %v2440_v61 = vunpack.i.l.bf16 %v2439_v57  ;;  %v2449_v10 = vpop.permute.xlu1 %2448 }
 0x5c1   :  { %v2451_v17 = vunpack.i.h.bf16 %v2449_v10  ;;  %v2450_v19 = vunpack.i.l.bf16 %v2449_v10 }
 0x5c2   :  { %v2307_v7 = vpack.c.bf16 %v2441_v60, %v2440_v61 }
 0x5c3   :  { %v2317_v22 = vpack.c.bf16 %v2451_v17, %v2450_v19 }
 0x5c4   :  { %2308 = vmatprep.subr.bf16.mxu1 %v2307_v7 }
 0x5c5   :  { %2310 = vmatpush3.bf16.msra.mxu1 %v2307_v7 }
 0x5c6   :  { %v2537_v9 = vpop.eup %2536  ;;  %2313 = vmatprep.subr.msk.bf16.mxu1 %vm2772_vm2, %v2311_v8 }
 0x5c7   :  { %v2539_v11 = vpop.eup %2538  ;;  %v670_v14 = vmul.f32 %v2537_v9, %v2529_v36 }
 0x5c8   :  { %v669_v12 = vmul.f32 %v2539_v11, %v2531_v37 }
 0x5ca   :  { %2151 = vmatprep.mubr.msk.f32.mxu1 %vm68_vm0, %v669_v12 }
 0x5cb   :  { %2152 = vmatmul.mubr.msk.f32.vlgmr.msra.gmra.mrb[4].mxu1 %vm68_vm0, %v670_v14 }
 0x5ce   :  { %2316 = vmatpush3.bf16.xpose.msk.msra.mxu1 %vm2772_vm2, %v2311_v8 }
 0x5cf   :  { %2319 = vmatprep.subr.msk.bf16.mxu1 %vm2772_vm2, %v2317_v22 }
 0x5d6   :  { %2322 = vmatpush3.bf16.xpose.msk.msra.mxu1 %vm2772_vm2, %v2317_v22 }
 0x5f0   :  { %v664_v23 = vpop.xlane.xlu0 %663 }
 0x5f1   :  { %2540 = vrcp.f32 %v664_v23  ;;  %v661_v24 = vpop.xlane.xlu1 %660 }
 0x5f2   :  { %2542 = vrcp.f32 %v661_v24 }
 0x5f4   :  { %v783_v29 = vpop.permute.xlu0 %782 }
 0x5f5   :  { %v785_v31 = vpop.permute.xlu1 %784 }
 0x5f8   :  { %v787_v32 = vpop.permute.xlu0 %786 }
 0x5f9   :  { %v789_v33 = vpop.permute.xlu1 %788 }
 0x5fb   :  { %v2541_v26 = vpop.eup %2540 }
 0x5fc   :  { %v2543_v27 = vpop.eup %2542  ;;  %v672_v30 = vmul.f32 %v2541_v26, %v2533_v49 }
 0x5fd   :  { %v671_v28 = vmul.f32 %v2543_v27, %v2535_v50 }
 0x5ff   :  { %2154 = vmatprep.mubr.msk.f32.mxu1 %vm68_vm0, %v671_v28 }
 0x600   :  { %2155 = vmatmul.mubr.msk.f32.gmra.mrb[6].mxu1 %vm68_vm0, %v672_v30 }
 0x601   :  { %2165 = vmatprep.mubr.msk.f32.mxu1 %vm249_vm1, %v783_v29 }
 0x604   :  { %2166 = vmatmul.mubr.msk.f32.vlgmr.msra.gmra.mrb[8].mxu1 %vm249_vm1, %v785_v31 }
 0x605   :  { %2168 = vmatprep.mubr.msk.f32.mxu1 %vm249_vm1, %v787_v32 }
 0x608   :  { %2169 = vmatmul.mubr.msk.f32.gmra.mrb[10].mxu1 %vm249_vm1, %v789_v33 }
 0x69e   :  { %v2900_v34 = vpop.f32.mrb[4].mxu1 }
 0x69f   :  { %v2902_v35 = vpop.f32.mrb[5].mxu1 }
 0x6d3   :  { %v2904_v36 = vpop.f32.mrb[6].mxu1 }
 0x6d4   :  { %v2906_v37 = vpop.f32.mrb[7].mxu1 }
 0x6d7   :  { %v2167_v38 = vpop.f32.mrb[8].mxu1 }
 0x6d8   :  { %v900_v39 = vsel %vm2794_vm4, %v2167_v38, -1e+30  ;;  %v880_v41 = vpop.f32.mrb[9].mxu1 }
 0x6d9   :  { %v899_v42 = vsel %vm2790_vm3, %v880_v41, -1e+30  ;;  %v906_v44 = vsel %vm68_vm0, %v900_v39, -inf }
 0x6da   :  { %907 = vmax.xlane.f32.xlu1 %v906_v44  ;;  %v903_v45 = vsel %vm68_vm0, %v899_v42, -inf }
 0x6db   :  { %904 = vmax.xlane.f32.xlu0 %v903_v45  ;;  %v2170_v46 = vpop.f32.mrb[10].mxu1 }
 0x6dc   :  { %v890_v47 = vpop.f32.mrb[11].mxu1  ;;  %v902_v52 = vsel %vm2807_vm6, %v2170_v46, -1e+30 }
 0x6dd   :  { %v901_v49 = vsel %vm2801_vm5, %v890_v47, -1e+30  ;;  %v912_v53 = vsel %vm68_vm0, %v902_v52, -inf }
 0x6de   :  { %v909_v50 = vsel %vm68_vm0, %v901_v49, -inf }
 0x6df   :  { %910 = vmax.xlane.f32.xlu0 %v909_v50 }
 0x6e3   :  { %913 = vmax.xlane.f32.xlu0 %v912_v53 }
 0x6eb   :  { %2453 = vrot.lane.b32.xlu1 %v2758_v16, %s2679_s12 }
 0x6ef   :  { %2463 = vrot.lane.b32.xlu1 %v2758_v16, %s2680_s13 }
 0x6f3   :  { %2468 = vrot.lane.b32.xlu1 %v2767_v21, %s2680_s13 }
 0x767   :  { %v908_v54 = vpop.xlane.xlu1 %907 }
 0x768   :  { %v916_v55 = vsub.f32 %v900_v39, %v908_v54  ;;  %v905_v56 = vpop.xlane.xlu0 %904 }
 0x769   :  { %v915_v57 = vsub.f32 %v899_v42, %v905_v56 }
 0x76a   :  { %v921_v58 = vmul.f32 1.442695, %v916_v55 }
 0x76b   :  { %v919_v59 = vmul.f32 1.442695, %v915_v57  ;;  %v2454_v60 = vpop.permute.xlu1 %2453 }
 0x76c   :  { %2544 = vpow2.f32 %v921_v58  ;;  %v2456_v61 = vunpack.i.h.bf16 %v2454_v60  ;;  %v2455_v7 = vunpack.i.l.bf16 %v2454_v60  ;;  %v911_v14 = vpop.xlane.xlu0 %910 }
 0x76d   :  { %2546 = vpow2.f32 %v919_v59  ;;  %v917_v22 = vsub.f32 %v901_v49, %v911_v14 }
 0x76e   :  { %v2323_v8 = vpack.c.bf16 %v2456_v61, %v2455_v7 }
 0x76f   :  { %v923_v24 = vmul.f32 1.442695, %v917_v22 }
 0x770   :  { %2324 = vmatprep.subr.bf16.mxu0 %v2323_v8  ;;  %v914_v17 = vpop.xlane.xlu0 %913 }
 0x771   :  { %2326 = vmatpush3.bf16.msra.mxu0 %v2323_v8  ;;  %v918_v19 = vsub.f32 %v902_v52, %v914_v17 }
 0x773   :  { %v925_v23 = vmul.f32 1.442695, %v918_v19 }
 0x775   :  { %2548 = vpow2.f32 %v925_v23 }
 0x776   :  { %v2545_v9 = vpop.eup %2544  ;;  %2550 = vpow2.f32 %v923_v24 }
 0x777   :  { %v2547_v10 = vpop.eup %2546  ;;  %v930_v11 = vsel %vm68_vm0, %v2545_v9, 0.0 }
 0x778   :  { %931 = vadd.xlane.f32.xlu0 %v930_v11  ;;  %v927_v12 = vsel %vm68_vm0, %v2547_v10, 0.0 }
 0x779   :  { %928 = vadd.xlane.f32.xlu1 %v927_v12 }
 0x77f   :  { %v2549_v26 = vpop.eup %2548 }
 0x780   :  { %v2551_v27 = vpop.eup %2550  ;;  %v936_v28 = vsel %vm68_vm0, %v2549_v26, 0.0 }
 0x781   :  { %v933_v29 = vsel %vm68_vm0, %v2551_v27, 0.0 }
 0x78a   :  { %1058 = vrot.lane.b32.xlu1 %v2750_v13, %s2681_s14  ;;  %v2464_v13 = vpop.permute.xlu1 %2463 }
 0x78b   :  { %v2466_v38 = vunpack.i.h.bf16 %v2464_v13  ;;  %v2465_v39 = vunpack.i.l.bf16 %v2464_v13 }
 0x78d   :  { %v2331_v45 = vpack.c.bf16 %v2466_v38, %v2465_v39 }
 0x78e   :  { %2458 = vrot.lane.b32.xlu0 %v2767_v21, %s2679_s12  ;;  %v2469_v30 = vpop.permute.xlu1 %2468 }
 0x78f   :  { %v2471_v46 = vunpack.i.h.bf16 %v2469_v30  ;;  %v2470_v47 = vunpack.i.l.bf16 %v2469_v30 }
 0x791   :  { %v2337_v50 = vpack.c.bf16 %v2471_v46, %v2470_v47  ;;  %v2487_v47 = vpack.i.bf16 %v2742_v5, %v2736_v2 }
 0x7ad   :  { %937 = vadd.xlane.f32.xlu0 %v936_v28 }
 0x7ae   :  { %934 = vadd.xlane.f32.xlu1 %v933_v29 }
 0x7bf   :  { %1062 = vrot.lane.b32.xlu1 %v2760_v18, %s2681_s14 }
 0x7c3   :  { %1056 = vrot.lane.b32.xlu0 %v2752_v15, %s2681_s14 }
 0x7c7   :  { %1060 = vrot.lane.b32.xlu0 %v2763_v20, %s2681_s14 }
 0x805   :  { %v932_v31 = vpop.xlane.xlu0 %931 }
 0x806   :  { %2552 = vrcp.f32 %v932_v31  ;;  %v929_v32 = vpop.xlane.xlu1 %928 }
 0x807   :  { %2554 = vrcp.f32 %v929_v32 }
 0x809   :  { %v2459_v33 = vpop.permute.xlu0 %2458 }
 0x80a   :  { %v2461_v41 = vunpack.i.h.bf16 %v2459_v33  ;;  %v2460_v42 = vunpack.i.l.bf16 %v2459_v33  ;;  %v1059_v52 = vpop.permute.xlu1 %1058 }
 0x80c   :  { %v2327_v44 = vpack.c.bf16 %v2461_v41, %v2460_v42 }
 0x80e   :  { %2328 = vmatprep.subr.bf16.mxu0 %v2327_v44 }
 0x80f   :  { %2330 = vmatpush3.bf16.msra.mxu0 %v2327_v44 }
 0x810   :  { %v2553_v18 = vpop.eup %2552  ;;  %2333 = vmatprep.subr.msk.bf16.mxu0 %vm2772_vm2, %v2331_v45 }
 0x811   :  { %v2555_v15 = vpop.eup %2554  ;;  %v944_v49 = vmul.f32 %v2553_v18, %v2545_v9 }
 0x812   :  { %v943_v20 = vmul.f32 %v2555_v15, %v2547_v10 }
 0x814   :  { %2179 = vmatprep.mubr.msk.f32.mxu0 %vm68_vm0, %v943_v20 }
 0x815   :  { %2180 = vmatmul.mubr.msk.f32.vlgmr.msra.gmra.mrb[12].mxu0 %vm68_vm0, %v944_v49 }
 0x818   :  { %2336 = vmatpush3.bf16.xpose.msk.msra.mxu0 %vm2772_vm2, %v2331_v45 }
 0x819   :  { %2339 = vmatprep.subr.msk.bf16.mxu0 %vm2772_vm2, %v2337_v50 }
 0x820   :  { %2342 = vmatpush3.bf16.xpose.msk.msra.mxu0 %vm2772_vm2, %v2337_v50 }
 0x83a   :  { %v938_v53 = vpop.xlane.xlu0 %937 }
 0x83b   :  { %2556 = vrcp.f32 %v938_v53  ;;  %v935_v54 = vpop.xlane.xlu1 %934 }
 0x83c   :  { %2558 = vrcp.f32 %v935_v54 }
 0x83e   :  { %v1057_v58 = vpop.permute.xlu0 %1056 }
 0x83f   :  { %v1063_v25 = vpop.permute.xlu1 %1062 }
 0x842   :  { %v1061_v60 = vpop.permute.xlu0 %1060 }
 0x845   :  { %v2557_v55 = vpop.eup %2556 }
 0x846   :  { %v2559_v56 = vpop.eup %2558  ;;  %v946_v59 = vmul.f32 %v2557_v55, %v2549_v26 }
 0x847   :  { %v945_v57 = vmul.f32 %v2559_v56, %v2551_v27 }
 0x849   :  { %2182 = vmatprep.mubr.msk.f32.mxu0 %vm68_vm0, %v945_v57 }
 0x84a   :  { %2183 = vmatmul.mubr.msk.f32.gmra.mrb[14].mxu0 %vm68_vm0, %v946_v59 }
 0x84b   :  { %2193 = vmatprep.mubr.msk.f32.mxu0 %vm249_vm1, %v1057_v58 }
 0x84e   :  { %2194 = vmatmul.mubr.msk.f32.vlgmr.msra.gmra.mrb[16].mxu0 %vm249_vm1, %v1059_v52 }
 0x84f   :  { %2196 = vmatprep.mubr.msk.f32.mxu0 %vm249_vm1, %v1061_v60 }
 0x852   :  { %2197 = vmatmul.mubr.msk.f32.gmra.mrb[18].mxu0 %vm249_vm1, %v1063_v25 }
 0x8e8   :  { %v2181_v61 = vpop.f32.mrb[12].mxu0 }
 0x8e9   :  { %v1037_v7 = vpop.f32.mrb[13].mxu0 }
 0x91d   :  { %v2184_v8 = vpop.f32.mrb[14].mxu0 }
 0x91e   :  { %v1047_v9 = vpop.f32.mrb[15].mxu0 }
 0x921   :  { %v2195_v10 = vpop.f32.mrb[16].mxu0 }
 0x922   :  { %v1174_v11 = vsel %vm2794_vm4, %v2195_v10, -1e+30  ;;  %v1154_v12 = vpop.f32.mrb[17].mxu0 }
 0x923   :  { %v1173_v14 = vsel %vm2790_vm3, %v1154_v12, -1e+30  ;;  %v1180_v17 = vsel %vm68_vm0, %v1174_v11, -inf }
 0x924   :  { %1181 = vmax.xlane.f32.xlu1 %v1180_v17  ;;  %v1177_v19 = vsel %vm68_vm0, %v1173_v14, -inf }
 0x925   :  { %1178 = vmax.xlane.f32.xlu0 %v1177_v19  ;;  %v2198_v22 = vpop.f32.mrb[18].mxu0 }
 0x926   :  { %v1164_v23 = vpop.f32.mrb[19].mxu0  ;;  %v1176_v43 = vsel %vm2807_vm6, %v2198_v22, -1e+30 }
 0x927   :  { %v1175_v24 = vsel %vm2801_vm5, %v1164_v23, -1e+30  ;;  %v1186_v40 = vsel %vm68_vm0, %v1176_v43, -inf }
 0x928   :  { %v1183_v26 = vsel %vm68_vm0, %v1175_v24, -inf }
 0x929   :  { %1184 = vmax.xlane.f32.xlu0 %v1183_v26 }
 0x92d   :  { %1187 = vmax.xlane.f32.xlu0 %v1186_v40 }
 0x9b1   :  { %v1182_v27 = vpop.xlane.xlu1 %1181 }
 0x9b2   :  { %v1190_v28 = vsub.f32 %v1174_v11, %v1182_v27  ;;  %v1179_v29 = vpop.xlane.xlu0 %1178 }
 0x9b3   :  { %v1189_v13 = vsub.f32 %v1173_v14, %v1179_v29 }
 0x9b4   :  { %v1195_v30 = vmul.f32 1.442695, %v1190_v28 }
 0x9b5   :  { %v1193_v31 = vmul.f32 1.442695, %v1189_v13 }
 0x9b6   :  { %2560 = vpow2.f32 %v1195_v30  ;;  %v1185_v32 = vpop.xlane.xlu0 %1184 }
 0x9b7   :  { %2562 = vpow2.f32 %v1193_v31  ;;  %v1191_v48 = vsub.f32 %v1175_v24, %v1185_v32 }
 0x9b9   :  { %v1197_v33 = vmul.f32 1.442695, %v1191_v48 }
 0x9ba   :  { %v1188_v38 = vpop.xlane.xlu0 %1187 }
 0x9bb   :  { %2564 = vpow2.f32 %v1197_v33  ;;  %v1192_v39 = vsub.f32 %v1176_v43, %v1188_v38 }
 0x9bd   :  { %v1199_v51 = vmul.f32 1.442695, %v1192_v39 }
 0x9bf   :  { %2566 = vpow2.f32 %v1199_v51 }
 0x9c0   :  { %v2561_v41 = vpop.eup %2560 }
 0x9c1   :  { %v2563_v42 = vpop.eup %2562  ;;  %v1204_v44 = vsel %vm68_vm0, %v2561_v41, 0.0 }
 0x9c2   :  { %1205 = vadd.xlane.f32.xlu0 %v1204_v44  ;;  %v1201_v45 = vsel %vm68_vm0, %v2563_v42, 0.0 }
 0x9c3   :  { %1202 = vadd.xlane.f32.xlu1 %v1201_v45 }
 0x9c5   :  { %v2565_v18 = vpop.eup %2564 }
 0x9c6   :  { %v1207_v15 = vsel %vm68_vm0, %v2565_v18, 0.0 }
 0x9c7   :  { %1208 = vadd.xlane.f32.xlu1 %v1207_v15 }
 0x9c9   :  { %v2567_v20 = vpop.eup %2566 }
 0x9ca   :  { %v1210_v46 = vsel %vm68_vm0, %v2567_v20, 0.0 }
 0x9cb   :  { %1211 = vadd.xlane.f32.xlu0 %v1210_v46  ;;  %v2592_v46 = vld [vmem:[#allocation2 + $0x8] sm:$0xff] }
 0x9d8   :  { %2473 = vrot.lane.b32.xlu1 %v2758_v16, %s2682_s15 }
 0x9dc   :  { %2483 = vrot.lane.b32.xlu1 %v2482_v3, %s2683_s16 }
 0x9e0   :  { %2488 = vrot.lane.b32.xlu1 %v2487_v47, %s2683_s16 }
 0x9e1   :  { %2478 = vrot.lane.b32.xlu0 %v2767_v21, %s2682_s15 }
 0x9e4   :  { %1336 = vrot.lane.b32.xlu1 %v2900_v34, %s2670_s20 }
 0x9e5   :  { %1334 = vrot.lane.b32.xlu0 %v2902_v35, %s2670_s20 }
 0x9e8   :  { %1352 = vrot.lane.b32.xlu1 %v2181_v61, %s2684_s17 }
 0x9e9   :  { %1350 = vrot.lane.b32.xlu0 %v1037_v7, %s2684_s17 }
 0x9ec   :  { %1340 = vrot.lane.b32.xlu1 %v2904_v36, %s2670_s20 }
 0x9ed   :  { %1338 = vrot.lane.b32.xlu0 %v2906_v37, %s2670_s20 }
 0x9f0   :  { %1356 = vrot.lane.b32.xlu1 %v2184_v8, %s2684_s17 }
 0x9f1   :  { %1354 = vrot.lane.b32.xlu0 %v1047_v9, %s2684_s17 }
 0xa4f   :  { %v1206_v1 = vpop.xlane.xlu0 %1205 }
 0xa50   :  { %v1203_v0 = vpop.xlane.xlu1 %1202 }
 0xa51   :  { %2568 = vrcp.f32 %v1203_v0  ;;  %v2593_v0 = vld [vmem:[#allocation2] sm:$0xff] }
 0xa52   :  { %2570 = vrcp.f32 %v1206_v1 }
 0xa54   :  { %v1209_v2 = vpop.xlane.xlu1 %1208 }
 0xa55   :  { %2572 = vrcp.f32 %v1209_v2 }
 0xa58   :  { %v2474_v3 = vpop.permute.xlu1 %2473  ;;  %v1212_v5 = vpop.xlane.xlu0 %1211 }
 0xa59   :  { %v2476_v16 = vunpack.i.h.bf16 %v2474_v3  ;;  %v2475_v21 = vunpack.i.l.bf16 %v2474_v3  ;;  %2574 = vrcp.f32 %v1212_v5 }
 0xa5b   :  { %v2569_v34 = vpop.eup %2568  ;;  %v2343_v35 = vpack.c.bf16 %v2476_v16, %v2475_v21 }
 0xa5c   :  { %v2484_v49 = vpop.permute.xlu1 %2483  ;;  %v2479_v36 = vpop.permute.xlu0 %2478  ;;  %v1217_v50 = vmul.f32 %v2569_v34, %v2563_v42  ;;  %v2594_v34 = vld [vmem:[#allocation2 + $0x10] sm:$0xff] }
 0xa5d   :  { %v2486_v52 = vunpack.i.h.bf16 %v2484_v49  ;;  %v2485_v37 = vunpack.i.l.bf16 %v2484_v49  ;;  %v2481_v53 = vunpack.i.h.bf16 %v2479_v36  ;;  %v2480_v54 = vunpack.i.l.bf16 %v2479_v36  ;;  %2344 = vmatprep.subr.bf16.mxu1 %v2343_v35  ;;  %v2571_v57 = vpop.eup %2570  ;;  %v2595_v36 = vld [vmem:[#allocation2 + $0x18] sm:$0xff] }
 0xa5e   :  { %2346 = vmatpush3.bf16.msra.mxu1 %v2343_v35  ;;  %2207 = vmatprep.mubr.msk.f32.mxu1 %vm68_vm0, %v1217_v50  ;;  %v1218_v61 = vmul.f32 %v2571_v57, %v2561_v41 }
 0xa5f   :  { %v2351_v55 = vpack.c.bf16 %v2486_v52, %v2485_v37  ;;  %v2347_v56 = vpack.c.bf16 %v2481_v53, %v2480_v54  ;;  %v2573_v59 = vpop.eup %2572 }
 0xa60   :  { %v2489_v58 = vpop.permute.xlu1 %2488  ;;  %v1219_v9 = vmul.f32 %v2573_v59, %v2565_v18  ;;  %v1335_v22 = vpop.permute.xlu0 %1334 }
 0xa61   :  { %v2491_v60 = vunpack.i.h.bf16 %v2489_v58  ;;  %v2490_v25 = vunpack.i.l.bf16 %v2489_v58  ;;  %2348 = vmatprep.subr.bf16.mxu1 %v2347_v56  ;;  %v1378_v28 = vsel %vm249_vm1, %v2854_v63, %v1335_v22  ;;  %v48_v22 = vld [vmem:[#allocation5 + $0x20] sm:$0xff] }
 0xa62   :  { %2350 = vmatpush3.bf16.msra.mxu1 %v2347_v56 }
 0xa63   :  { %v2355_v7 = vpack.c.bf16 %v2491_v60, %v2490_v25  ;;  %2352 = vmatprep.subr.bf16.mxu1 %v2351_v55  ;;  %v2575_v8 = vpop.eup %2574 }
 0xa64   :  { %v1220_v10 = vmul.f32 %v2575_v8, %v2567_v20  ;;  %v1337_v19 = vpop.permute.xlu1 %1336  ;;  %v1351_v24 = vpop.permute.xlu0 %1350 }
 0xa65   :  { %2208 = vmatmul.mubr.msk.f32.vlgmr.msra.gmra.mrb[12].mxu1 %vm68_vm0, %v1218_v61  ;;  %v1379_v13 = vsel %vm249_vm1, %v2852_v62, %v1337_v19  ;;  %v1383_v30 = vsel %vm1382_vm7, %v1378_v28, %v1351_v24 }
 0xa66   :  { %2210 = vmatprep.mubr.msk.f32.mxu1 %vm68_vm0, %v1219_v9  ;;  %2354 = vmatpush3.bf16.msra.mxu1 %v2351_v55 }
 0xa67   :  { %2356 = vmatprep.subr.bf16.mxu1 %v2355_v7 }
 0xa68   :  { %v1353_v23 = vpop.permute.xlu1 %1352  ;;  %v1339_v43 = vpop.permute.xlu0 %1338 }
 0xa69   :  { %2211 = vmatmul.mubr.msk.f32.gmra.mrb[14].mxu1 %vm68_vm0, %v1220_v10  ;;  %v1384_v32 = vsel %vm1382_vm7, %v1379_v13, %v1353_v23  ;;  %v1380_v38 = vsel %vm249_vm1, %v2858_v6, %v1339_v43  ;;  %v1968_v6 = vld [vmem:[#allocation5 + $0x61] ss:$0 sm:$0xff]  ;;  %v49_v23 = vld [vmem:[#allocation5 + $0x28] sm:$0xff]  ;;  %v51_v43 = vld [vmem:[#allocation5 + $0x38] sm:$0xff] }
 0xa6a   :  { %2358 = vmatpush3.bf16.msra.mxu1 %v2355_v7  ;;  %v2359_v24 = vpack.c.bf16 %v49_v23, %v48_v22  ;;  %v53_v13 = vld [vmem:[#allocation5 + $0x48] sm:$0xff] }
 0xa6c   :  { %v1341_v26 = vpop.permute.xlu1 %1340  ;;  %v1355_v27 = vpop.permute.xlu0 %1354  ;;  %2360 = vmatprep.subr.bf16.mxu0 %v2359_v24 }
 0xa6d   :  { %v1381_v62 = vsel %vm249_vm1, %v2856_v4, %v1341_v26  ;;  %v1385_v39 = vsel %vm1382_vm7, %v1380_v38, %v1355_v27  ;;  %v50_v26 = vld [vmem:[#allocation5 + $0x30] sm:$0xff]  ;;  %2362 = vmatpush3.bf16.msra.mxu0 %v2359_v24  ;;  %v2492_v27 = vpack.i.bf16 %v49_v23, %v48_v22 }
 0xa6e   :  { %v2497_v28 = vpack.i.bf16 %v51_v43, %v50_v26 }
 0xa70   :  { %v1357_v40 = vpop.permute.xlu1 %1356 }
 0xa71   :  { %v1386_v41 = vsel %vm1382_vm7, %v1381_v62, %v1357_v40  ;;  %v2363_v40 = vpack.c.bf16 %v51_v43, %v50_v26 }
 0xa73   :  { %2364 = vmatprep.subr.bf16.mxu0 %v2363_v40 }
 0xa74   :  { %2366 = vmatpush3.bf16.msra.mxu0 %v2363_v40 }
 0xb38   :  { %v2209_v11 = vpop.f32.mrb[12].mxu1 }
 0xb39   :  { %1368 = vrot.lane.b32.xlu1 %v2209_v11, %s2685_s18  ;;  %v1311_v12 = vpop.f32.mrb[13].mxu1 }
 0xb3a   :  { %1366 = vrot.lane.b32.xlu0 %v1311_v12, %s2685_s18 }
 0xb3c   :  { %v2212_v14 = vpop.f32.mrb[14].mxu1 }
 0xb3d   :  { %1372 = vrot.lane.b32.xlu1 %v2212_v14, %s2685_s18  ;;  %v1321_v17 = vpop.f32.mrb[15].mxu1 }
 0xb3e   :  { %1370 = vrot.lane.b32.xlu0 %v1321_v17, %s2685_s18 }
 0xbab   :  { %v1369_v29 = vpop.permute.xlu1 %1368 }
 0xbac   :  { %v1367_v31 = vpop.permute.xlu0 %1366  ;;  %v1389_v33 = vsel %vm1387_vm8, %v1384_v32, %v1369_v29  ;;  %v52_v29 = vld [vmem:[#allocation5 + $0x40] sm:$0xff]  ;;  %v55_v32 = vld [vmem:[#allocation5 + $0x58] sm:$0xff] }
 0xbad   :  { %v1388_v48 = vsel %vm1387_vm8, %v1383_v30, %v1367_v31  ;;  %v2502_v30 = vpack.i.bf16 %v53_v13, %v52_v29  ;;  %v54_v31 = vld [vmem:[#allocation5 + $0x50] sm:$0xff]  ;;  %v1980_v13 = vld [vmem:[#allocation5 + $0x65] ss:$0 sm:$0xff] }
 0xbae   :  { %2221 = vmatprep.mubr.msk.f32.mxu1 %vm68_vm0, %v1388_v48  ;;  %v2507_v48 = vpack.i.bf16 %v55_v32, %v54_v31 }
 0xbaf   :  { %2222 = vmatmul.mubr.msk.f32.vlgmr.msra.gmra.mrb[16].mxu1 %vm68_vm0, %v1389_v33  ;;  %v1373_v63 = vpop.permute.xlu1 %1372 }
 0xbb0   :  { %v1371_v51 = vpop.permute.xlu0 %1370  ;;  %v1391_v44 = vsel %vm1387_vm8, %v1386_v41, %v1373_v63 }
 0xbb1   :  { %v1390_v42 = vsel %vm1387_vm8, %v1385_v39, %v1371_v51 }
 0xbb2   :  { %2224 = vmatprep.mubr.msk.f32.mxu1 %vm68_vm0, %v1390_v42 }
 0xbb3   :  { %2225 = vmatmul.mubr.msk.f32.gmra.mrb[18].mxu1 %vm68_vm0, %v1391_v44 }
 0xc82   :  { %v2223_v45 = vpop.f32.mrb[16].mxu1 }
 0xc83   :  { %v1496_v18 = vadd.f32 %v2223_v45, %v1968_v6  ;;  %v1490_v15 = vpop.f32.mrb[17].mxu1 }
 0xc84   :  { %v1491_v20 = vadd.f32 %v1968_v6, %v1490_v15 }
 0xc85   :  { %v1510_v4 = vadd.f32 %v2592_v46, %v1496_v18 }
 0xc86   :  { %v2226_v47 = vpop.f32.mrb[18].mxu1  ;;  %v1509_v1 = vadd.f32 %v2593_v0, %v1491_v20  ;;  %v1973_v20 = vld [vmem:[#allocation5 + $0x62] ss:$0 sm:$0xff]  ;;  %v1974_v0 = vld [vmem:[#allocation5 + $0x63] ss:$0 sm:$0xff] }
 0xc87   :  { %v1500_v2 = vpop.f32.mrb[19].mxu1  ;;  %v1516_v3 = vsel %vm68_vm0, %v1510_v4, 0.0  ;;  %v1506_v5 = vadd.f32 %v2226_v47, %v1968_v6 }
 0xc88   :  { %v1501_v16 = vadd.f32 %v1968_v6, %v1500_v2  ;;  %1517 = vadd.xlane.f32.xlu1 %v1516_v3  ;;  %v1513_v21 = vsel %vm68_vm0, %v1509_v1, 0.0 }
 0xc89   :  { %1514 = vadd.xlane.f32.xlu0 %v1513_v21  ;;  %v1512_v50 = vadd.f32 %v2595_v36, %v1506_v5 }
 0xc8a   :  { %v1511_v35 = vadd.f32 %v2594_v34, %v1501_v16 }
 0xc8b   :  { %v1522_v52 = vsel %vm68_vm0, %v1512_v50, 0.0 }
 0xc8c   :  { %v1519_v49 = vsel %vm68_vm0, %v1511_v35, 0.0 }
 0xc8d   :  { %1520 = vadd.xlane.f32.xlu0 %v1519_v49 }
 0xc91   :  { %1523 = vadd.xlane.f32.xlu0 %v1522_v52 }
 0xd15   :  { %v1518_v37 = vpop.xlane.xlu1 %1517 }
 0xd16   :  { %v1527_v53 = vmul.f32 0.03125, %v1518_v37  ;;  %v1515_v54 = vpop.xlane.xlu0 %1514 }
 0xd17   :  { %v1526_v55 = vmul.f32 0.03125, %v1515_v54 }
 0xd18   :  { %v1531_v56 = vsub.f32 %v1510_v4, %v1527_v53 }
 0xd19   :  { %v1530_v57 = vsub.f32 %v1509_v1, %v1526_v55 }
 0xd1a   :  { %v1521_v58 = vpop.xlane.xlu0 %1520  ;;  %v1535_v59 = vmul.f32 %v1531_v56, %v1531_v56 }
 0xd1b   :  { %v1528_v60 = vmul.f32 0.03125, %v1521_v58  ;;  %v1534_v25 = vmul.f32 %v1530_v57, %v1530_v57 }
 0xd1c   :  { %v1541_v61 = vsel %vm68_vm0, %v1535_v59, 0.0 }
 0xd1d   :  { %v3008_v7 = vsub.f32 %v1511_v35, %v1528_v60  ;;  %1542 = vadd.xlane.f32.xlu0 %v1541_v61  ;;  %v1538_v8 = vsel %vm68_vm0, %v1534_v25, 0.0 }
 0xd1e   :  { %1539 = vadd.xlane.f32.xlu1 %v1538_v8  ;;  %v1524_v9 = vpop.xlane.xlu0 %1523 }
 0xd1f   :  { %v1529_v10 = vmul.f32 0.03125, %v1524_v9  ;;  %v1536_v11 = vmul.f32 %v3008_v7, %v3008_v7 }
 0xd21   :  { %v3013_v12 = vsub.f32 %v1512_v50, %v1529_v10  ;;  %v1544_v14 = vsel %vm68_vm0, %v1536_v11, 0.0 }
 0xd22   :  { %1545 = vadd.xlane.f32.xlu1 %v1544_v14  ;;  %v1975_v14 = vld [vmem:[#allocation5 + $0x64] ss:$0 sm:$0xff] }
 0xd23   :  { %v1537_v17 = vmul.f32 %v3013_v12, %v3013_v12 }
 0xd25   :  { %v1547_v19 = vsel %vm68_vm0, %v1537_v17, 0.0 }
 0xd26   :  { %1548 = vadd.xlane.f32.xlu0 %v1547_v19 }
 0xd33   :  { %2493 = vrot.lane.b32.xlu1 %v2492_v27, %s2673_s6 }
 0xd37   :  { %2503 = vrot.lane.b32.xlu1 %v2502_v30, %s2673_s6 }
 0xd3b   :  { %2508 = vrot.lane.b32.xlu1 %v2507_v48, %s2673_s6 }
 0xd3c   :  { %2498 = vrot.lane.b32.xlu0 %v2497_v28, %s2673_s6 }
 0xdaa   :  { %v1543_v33 = vpop.xlane.xlu0 %1542 }
 0xdab   :  { %v1551_v38 = vmul.f32 0.03125, %v1543_v33  ;;  %v1540_v63 = vpop.xlane.xlu1 %1539 }
 0xdac   :  { %v1550_v62 = vmul.f32 0.03125, %v1540_v63 }
 0xdad   :  { %v1555_v39 = vadd.f32 1e-05, %v1551_v38 }
 0xdae   :  { %v1554_v51 = vadd.f32 1e-05, %v1550_v62 }
 0xdaf   :  { %2576 = vrsqrt.f32 %v1555_v39  ;;  %v1546_v41 = vpop.xlane.xlu1 %1545 }
 0xdb0   :  { %2578 = vrsqrt.f32 %v1554_v51  ;;  %v1552_v42 = vmul.f32 0.03125, %v1546_v41 }
 0xdb2   :  { %v1556_v44 = vadd.f32 1e-05, %v1552_v42 }
 0xdb3   :  { %v1549_v6 = vpop.xlane.xlu0 %1548  ;;  %v2494_v3 = vpop.permute.xlu1 %2493 }
 0xdb4   :  { %2580 = vrsqrt.f32 %v1556_v44  ;;  %v1553_v45 = vmul.f32 0.03125, %v1549_v6  ;;  %v2496_v21 = vunpack.i.h.bf16 %v2494_v3  ;;  %v2495_v34 = vunpack.i.l.bf16 %v2494_v3 }
 0xdb6   :  { %v1557_v18 = vadd.f32 1e-05, %v1553_v45  ;;  %v2367_v37 = vpack.c.bf16 %v2496_v21, %v2495_v34 }
 0xdb7   :  { %v2499_v5 = vpop.permute.xlu0 %2498  ;;  %v2504_v55 = vpop.permute.xlu1 %2503 }
 0xdb8   :  { %2582 = vrsqrt.f32 %v1557_v18  ;;  %v2501_v35 = vunpack.i.h.bf16 %v2499_v5  ;;  %v2500_v50 = vunpack.i.l.bf16 %v2499_v5  ;;  %2368 = vmatprep.subr.bf16.mxu1 %v2367_v37  ;;  %v2505_v58 = vunpack.i.l.bf16 %v2504_v55 }
 0xdb9   :  { %v2577_v15 = vpop.eup %2576  ;;  %2370 = vmatpush3.bf16.msra.mxu1 %v2367_v37 }
 0xdba   :  { %v2579_v46 = vpop.eup %2578  ;;  %v1563_v4 = vmul.f32 %v2577_v15, %v1531_v56  ;;  %v2371_v54 = vpack.c.bf16 %v2501_v35, %v2500_v50 }
 0xdbb   :  { %v1562_v47 = vmul.f32 %v2579_v46, %v1530_v57  ;;  %v2506_v57 = vunpack.i.h.bf16 %v2504_v55 }
 0xdbc   :  { %v1571_v1 = vmul.f32 %v1973_v20, %v1563_v4  ;;  %2372 = vmatprep.subr.bf16.mxu1 %v2371_v54 }
 0xdbd   :  { %v1570_v2 = vmul.f32 %v1973_v20, %v1562_v47  ;;  %v2375_v25 = vpack.c.bf16 %v2506_v57, %v2505_v58  ;;  %2374 = vmatpush3.bf16.msra.mxu1 %v2371_v54 }
 0xdbe   :  { %v2581_v16 = vpop.eup %2580  ;;  %v1579_v52 = vadd.f32 %v1974_v0, %v1571_v1 }
 0xdbf   :  { %v1578_v49 = vadd.f32 %v1974_v0, %v1570_v2  ;;  %v1564_v36 = vmul.f32 %v2581_v16, %v3008_v7  ;;  %v2509_v7 = vpop.permute.xlu1 %2508  ;;  %2376 = vmatprep.subr.bf16.mxu1 %v2375_v25 }
 0xdc0   :  { %v2511_v8 = vunpack.i.h.bf16 %v2509_v7  ;;  %v2510_v9 = vunpack.i.l.bf16 %v2509_v7 }
 0xdc1   :  { %2235 = vmatprep.mubr.msk.f32.mxu0 %vm68_vm0, %v1578_v49  ;;  %v1572_v53 = vmul.f32 %v1973_v20, %v1564_v36  ;;  %2378 = vmatpush3.bf16.msra.mxu1 %v2375_v25 }
 0xdc2   :  { %v2583_v56 = vpop.eup %2582  ;;  %2236 = vmatmul.mubr.msk.f32.vlgmr.msra.gmra.mrb[20].mxu0 %vm68_vm0, %v1579_v52  ;;  %v2379_v11 = vpack.c.bf16 %v2511_v8, %v2510_v9 }
 0xdc3   :  { %v1580_v59 = vadd.f32 %v1974_v0, %v1572_v53  ;;  %v1565_v60 = vmul.f32 %v2583_v56, %v3013_v12 }
 0xdc4   :  { %2380 = vmatprep.subr.bf16.mxu1 %v2379_v11 }
 0xdc5   :  { %2238 = vmatprep.mubr.msk.f32.mxu0 %vm68_vm0, %v1580_v59  ;;  %v1573_v61 = vmul.f32 %v1973_v20, %v1565_v60  ;;  %2382 = vmatpush3.bf16.msra.mxu1 %v2379_v11 }
 0xdc7   :  { %v1581_v10 = vadd.f32 %v1974_v0, %v1573_v61 }
 0xdc9   :  { %2239 = vmatmul.mubr.msk.f32.gmra.mrb[22].mxu0 %vm68_vm0, %v1581_v10 }
 0xe95   :  { %v2237_v12 = vpop.f32.mrb[20].mxu0 }
 0xe96   :  { %v1670_v17 = vadd.f32 %v2237_v12, %v1975_v14  ;;  %v1664_v19 = vpop.f32.mrb[21].mxu0 }
 0xe97   :  { %v1665_v22 = vadd.f32 %v1975_v14, %v1664_v19  ;;  %v1986_v19 = vld [vmem:[#allocation5 + $0x67] ss:$0 sm:$0xff] }
 0xe98   :  { %v1684_v24 = vmax.f32 %v1670_v17, 0.0 }
 0xe99   :  { %v1683_v23 = vmax.f32 %v1665_v22, 0.0 }
 0xe9b   :  { %2257 = vmatprep.mubr.msk.f32.mxu1 %vm1723_vm9, %v1683_v23 }
 0xe9c   :  { %v2240_v26 = vpop.f32.mrb[22].mxu0  ;;  %2258 = vmatmul.mubr.msk.f32.vlgmr.msra.gmra.mrb[20].mxu1 %vm1723_vm9, %v1684_v24 }
 0xe9d   :  { %v1680_v43 = vadd.f32 %v2240_v26, %v1975_v14  ;;  %v1674_v40 = vpop.f32.mrb[23].mxu0 }
 0xe9e   :  { %v1675_v27 = vadd.f32 %v1975_v14, %v1674_v40 }
 0xe9f   :  { %v1686_v29 = vmax.f32 %v1680_v43, 0.0 }
 0xea0   :  { %v1685_v28 = vmax.f32 %v1675_v27, 0.0 }
 0xea2   :  { %2260 = vmatprep.mubr.msk.f32.mxu1 %vm1723_vm9, %v1685_v28 }
 0xea3   :  { %2261 = vmatmul.mubr.msk.f32.gmra.mrb[22].mxu1 %vm1723_vm9, %v1686_v29 }
 0xf6f   :  { %v2259_v30 = vpop.f32.mrb[20].mxu1 }
 0xf70   :  { %v1808_v31 = vadd.f32 %v2259_v30, %v1980_v13  ;;  %v1802_v32 = vpop.f32.mrb[21].mxu1 }
 0xf71   :  { %v1803_v48 = vadd.f32 %v1980_v13, %v1802_v32 }
 0xf72   :  { %v1822_v33 = vadd.f32 %v1808_v31, %v1579_v52 }
 0xf73   :  { %v1821_v38 = vadd.f32 %v1803_v48, %v1578_v49 }
 0xf74   :  { %v1828_v63 = vsel %vm68_vm0, %v1822_v33, 0.0 }
 0xf75   :  { %1829 = vadd.xlane.f32.xlu1 %v1828_v63  ;;  %v1825_v62 = vsel %vm68_vm0, %v1821_v38, 0.0 }
 0xf76   :  { %v2262_v39 = vpop.f32.mrb[22].mxu1  ;;  %1826 = vadd.xlane.f32.xlu0 %v1825_v62 }
 0xf77   :  { %v1812_v51 = vpop.f32.mrb[23].mxu1  ;;  %v1818_v41 = vadd.f32 %v2262_v39, %v1980_v13 }
 0xf78   :  { %v1813_v42 = vadd.f32 %v1980_v13, %v1812_v51 }
 0xf79   :  { %v1824_v45 = vadd.f32 %v1818_v41, %v1581_v10  ;;  %v1985_v10 = vld [vmem:[#allocation5 + $0x66] ss:$0 sm:$0xff] }
 0xf7a   :  { %v1823_v44 = vadd.f32 %v1813_v42, %v1580_v59 }
 0xf7b   :  { %v1834_v18 = vsel %vm68_vm0, %v1824_v45, 0.0 }
 0xf7c   :  { %v1831_v6 = vsel %vm68_vm0, %v1823_v44, 0.0 }
 0xf7d   :  { %1832 = vadd.xlane.f32.xlu0 %v1831_v6 }
 0xf81   :  { %1835 = vadd.xlane.f32.xlu0 %v1834_v18 }
0x1002   :  { %v1830_v15 = vpop.xlane.xlu1 %1829 }
0x1003   :  { %v1838_v20 = vmul.f32 0.03125, %v1830_v15  ;;  %v1827_v46 = vpop.xlane.xlu0 %1826 }
0x1004   :  { %v1837_v4 = vmul.f32 0.03125, %v1827_v46 }
0x1005   :  { %v1842_v47 = vsub.f32 %v1822_v33, %v1838_v20 }
0x1006   :  { %v1841_v0 = vsub.f32 %v1821_v38, %v1837_v4 }
0x1007   :  { %v1846_v1 = vmul.f32 %v1842_v47, %v1842_v47 }
0x1008   :  { %v1845_v2 = vmul.f32 %v1841_v0, %v1841_v0 }
0x1009   :  { %v1852_v3 = vsel %vm68_vm0, %v1846_v1, 0.0 }
0x100a   :  { %1853 = vadd.xlane.f32.xlu0 %v1852_v3  ;;  %v1833_v5 = vpop.xlane.xlu0 %1832  ;;  %v1849_v16 = vsel %vm68_vm0, %v1845_v2, 0.0 }
0x100b   :  { %v1839_v21 = vmul.f32 0.03125, %v1833_v5  ;;  %1850 = vadd.xlane.f32.xlu1 %v1849_v16 }
0x100d   :  { %v1843_v34 = vsub.f32 %v1823_v44, %v1839_v21 }
0x100e   :  { %v1836_v35 = vpop.xlane.xlu0 %1835 }
0x100f   :  { %v1840_v49 = vmul.f32 0.03125, %v1836_v35  ;;  %v1847_v36 = vmul.f32 %v1843_v34, %v1843_v34 }
0x1011   :  { %v1844_v50 = vsub.f32 %v1824_v45, %v1840_v49  ;;  %v1855_v52 = vsel %vm68_vm0, %v1847_v36, 0.0 }
0x1012   :  { %1856 = vadd.xlane.f32.xlu1 %v1855_v52 }
0x1013   :  { %v1848_v37 = vmul.f32 %v1844_v50, %v1844_v50 }
0x1015   :  { %v1858_v53 = vsel %vm68_vm0, %v1848_v37, 0.0 }
0x1016   :  { %1859 = vadd.xlane.f32.xlu0 %v1858_v53 }
0x1097   :  { %v1854_v54 = vpop.xlane.xlu0 %1853 }
0x1098   :  { %v1862_v55 = vmul.f32 0.03125, %v1854_v54  ;;  %v1851_v56 = vpop.xlane.xlu1 %1850 }
0x1099   :  { %v1861_v57 = vmul.f32 0.03125, %v1851_v56 }
0x109a   :  { %v1866_v58 = vadd.f32 1e-05, %v1862_v55 }
0x109b   :  { %v1865_v59 = vadd.f32 1e-05, %v1861_v57 }
0x109c   :  { %2584 = vrsqrt.f32 %v1866_v58 }
0x109d   :  { %2586 = vrsqrt.f32 %v1865_v59 }
0x109f   :  { %v1857_v60 = vpop.xlane.xlu1 %1856 }
0x10a0   :  { %v1863_v25 = vmul.f32 0.03125, %v1857_v60 }
0x10a2   :  { %v1867_v61 = vadd.f32 1e-05, %v1863_v25 }
0x10a3   :  { %v1860_v7 = vpop.xlane.xlu0 %1859 }
0x10a4   :  { %2588 = vrsqrt.f32 %v1867_v61  ;;  %v1864_v8 = vmul.f32 0.03125, %v1860_v7 }
0x10a6   :  { %v2585_v9 = vpop.eup %2584  ;;  %v1868_v11 = vadd.f32 1e-05, %v1864_v8 }
0x10a7   :  { %v2587_v14 = vpop.eup %2586  ;;  %v1874_v12 = vmul.f32 %v2585_v9, %v1842_v47 }
0x10a8   :  { %v1873_v17 = vmul.f32 %v2587_v14, %v1841_v0  ;;  %2590 = vrsqrt.f32 %v1868_v11 }
0x10a9   :  { %v1882_v22 = vmul.f32 %v1985_v10, %v1874_v12 }
0x10aa   :  { %v1881_v23 = vmul.f32 %v1985_v10, %v1873_v17 }
0x10ab   :  { %v1890_v24 = vadd.f32 %v1986_v19, %v1882_v22 }
0x10ac   :  { %v1889_v26 = vadd.f32 %v1986_v19, %v1881_v23 }
0x10ad   :  { %1894 = vst.msk [vmem:[#allocation7 + $0x8] sm:$0xff] %vm68_vm0, %v1890_v24 }
0x10ae   :  { %v2589_v43 = vpop.eup %2588  ;;  %1893 = vst.msk [vmem:[#allocation7] sm:$0xff] %vm68_vm0, %v1889_v26 }
0x10af   :  { %v1875_v40 = vmul.f32 %v2589_v43, %v1843_v34 }
0x10b1   :  { %v1883_v27 = vmul.f32 %v1985_v10, %v1875_v40 }
0x10b2   :  { %v2591_v28 = vpop.eup %2590 }
0x10b3   :  { %v1876_v29 = vmul.f32 %v2591_v28, %v1844_v50  ;;  %v1891_v13 = vadd.f32 %v1986_v19, %v1883_v27 }
0x10b5   :  { %v1884_v30 = vmul.f32 %v1985_v10, %v1876_v29  ;;  %1895 = vst.msk [vmem:[#allocation7 + $0x10] sm:$0xff] %vm68_vm0, %v1891_v13 }
0x10b7   :  { %v1892_v31 = vadd.f32 %v1986_v19, %v1884_v30 }
0x10b9   :  { %1896 = vst.msk [vmem:[#allocation7 + $0x18] sm:$0xff] %vm68_vm0, %v1892_v31 }
0x10ba   :  { %2651 = shalt.err (!%p2648_p6)
}
0x10bb   :  { %s2652_s26 = scalar_lea.hbm %s3058_s2, 512 }
0x10bc   :  { %p2653_p7 = scmp.ne.s32.totalorder %s3058_s2, %s2652_s26  ;;  %p2656_p8 = scmp.lt.u32.totalorder %s2652_s26, %s3058_s2 }
0x10be   :  { %p2658_p9 = pnand %p2656_p8, %p2653_p7 }
0x10c0   :  { %2661 = shalt.err (!%p2658_p9)
}
0x10c1   :  { %1908 = dma.vmem_to_hbm [thread:$0]  %s1903_s22, 512, %s3058_s2, [#allocation4], %s2669_s19, %s2669_s19, %s2670_s20  }
0x10c2   :  { %2666 = dma.done.wait [#allocation4], 512  }
0x10c3   :  { %2667 = vsyncadd [#allocation4], 4294966784 }
0x10c4   :  { %1912 = vsyncpa [#allocation3], 1 }
0x10c5   :  { %1913 = vsyncpa [#allocation6], 1 }
0x10c6   :  { %1914 = vsyncpa [#allocation4], 1 }

</bundles_post_ra>
